<compile_context>
chip_gen: v5e
topology: v5e:2x2
jax: 0.10.0
libtpu: 0.0.40
codegen_flags: <defaults>
</compile_context>

<pallas_src>
import functools

import jax
import jax.numpy as jnp
from jax import lax
from jax.experimental import pallas as pl
from jax.experimental.pallas import tpu as pltpu

EPS = 1e-5  # PyTorch BatchNorm2d default eps


def _round_up(x, m):
    return ((x + m - 1) // m) * m


def _relu6(x):
    return jnp.clip(x, 0.0, 6.0)


def _inv_res_kernel(xc_ref, xn_ref, w1_ref, s1_ref, b1_ref,
                    wdw_ref, s2_ref, b2_ref, w3_ref, s3_ref, b3_ref,
                    o_ref, *scratch,
                    stride, do_expand, use_res, height, width, mxu_dtype):
    """One (batch, output-row-tile) step of the fused InvertedResidual."""
    _, blk_rows, wp, cin_p = xc_ref.shape          # current input block
    ch_p = wdw_ref.shape[1]                        # padded hidden channels
    _, to_rows, wo, cout_p = o_ref.shape           # output tile
    halo = 3 - stride                              # extra depthwise rows needed
    ti_rows = blk_rows + halo
    t = pl.program_id(1)

    # Depthwise input rows = current block + first `halo` rows of next block
    # (x is pre-padded with one zero row/col per side in the wrapper).
    x_tile = jnp.concatenate([xc_ref[0], xn_ref[0, :halo]], axis=0)  # (ti, wp, cin_p) f32

    # ---- stage 1: 1x1 expand conv + folded BN + ReLU6 (MXU, bf16 operands) --
    if do_expand:
        lhs = x_tile.reshape(ti_rows * wp, cin_p).astype(mxu_dtype)
        h1 = jnp.dot(lhs, w1_ref[...], preferred_element_type=jnp.float32)
        h1 = _relu6(h1 * s1_ref[...] + b1_ref[...])
        h1 = h1.reshape(ti_rows, wp, ch_p)
    else:
        h1 = x_tile                                # expand_ratio == 1 (cin_p == ch_p)

    # ---- zero the spatial padding ring in-vreg (replaces the old padded
    #      scratch round trip).  Valid padded rows are 1..height, valid padded
    #      cols are 1..width; everything else must contribute 0. -------------
    row0 = t * blk_rows
    rows = row0 + lax.broadcasted_iota(jnp.int32, (ti_rows, 1, 1), 0)
    cols = lax.broadcasted_iota(jnp.int32, (1, wp, 1), 1)
    valid = (rows >= 1) & (rows <= height) & (cols >= 1) & (cols <= width)
    h1 = jnp.where(valid, h1, 0.0)

    # Residual slab (stride==1 only); slice early so x_tile's live range ends
    # before the depthwise loop.
    x_res = x_tile[1:1 + to_rows, 1:1 + wo, :] if use_res else None

    # ---- stage 2: 3x3 depthwise conv + folded BN + ReLU6 (VPU, f32) ---------
    wdw = wdw_ref[...]                             # (9, ch_p): read once, hoisted
    acc = jnp.zeros((to_rows, wo, ch_p), jnp.float32)
    if stride == 1:
        for kh in range(3):
            for kw in range(3):
                patch = h1[kh:kh + to_rows, kw:kw + wo, :]
                acc = acc + patch * wdw[kh * 3 + kw].reshape(1, 1, ch_p)
    else:
        # stride == 2: stage the masked activations once, compact the 4
        # (row, col) parity planes with strided pl.ds reads, then every tap is
        # a unit-stride slice.
        h1_scr = scratch[0]
        h1_scr[...] = h1
        planes = {}
        for pr in range(2):
            for pc in range(2):
                planes[(pr, pc)] = h1_scr[pl.ds(pr, to_rows + 1 - pr, stride=2),
                                          pl.ds(pc, wo + 1 - pc, stride=2), :]
        for kh in range(3):
            for kw in range(3):
                plane = planes[(kh % 2, kw % 2)]
                patch = plane[kh // 2:kh // 2 + to_rows, kw // 2:kw // 2 + wo, :]
                acc = acc + patch * wdw[kh * 3 + kw].reshape(1, 1, ch_p)

    h2 = _relu6(acc * s2_ref[...].reshape(1, 1, ch_p)
                + b2_ref[...].reshape(1, 1, ch_p))

    # ---- stage 3: 1x1 project conv + folded BN (MXU, bf16 operands) ---------
    out = jnp.dot(h2.reshape(to_rows * wo, ch_p).astype(mxu_dtype), w3_ref[...],
                  preferred_element_type=jnp.float32)
    out = out * s3_ref[...] + b3_ref[...]
    out = out.reshape(to_rows, wo, cout_p)

    if use_res:
        out = out + x_res

    o_ref[0] = out.astype(o_ref.dtype)             # lane-dense (cout_p = k*128) store


def _pick_tile_rows(ho, wo, wp, stride, cin_p, ch_p, cout_p,
                    budget_f32_elems=48 * 1024):
    """Largest divisor of Ho whose per-tile working set stays vreg/VMEM friendly."""
    best = 1
    for cand in range(1, ho + 1):
        if ho % cand:
            continue
        ti = (cand - 1) * stride + 3
        cost = (ti * wp * max(cin_p, ch_p)        # x tile / expanded activations
                + cand * wo * ch_p                # depthwise accumulator
                + cand * wo * cout_p)             # output tile
        if cost <= budget_f32_elems:
            best = cand
    return best


def inverted_residual(x_nchw, prepared, *, stride, expand_ratio,
                      mxu_dtype=jnp.bfloat16, tile_rows=None, interpret=False):
    """Forward pass of InvertedResidual. Input/output are NCHW like PyTorch."""
    assert stride in (1, 2)
    n, cin, h, w = x_nchw.shape
    hidden = int(round(cin * expand_ratio))
    cout = prepared["cout"]
    do_expand = expand_ratio != 1
    use_res = (stride == 1) and (cin == cout)

    cin_p = _round_up(cin, 128)
    ch_p = _round_up(hidden, 128)
    cout_p = _round_up(cout, 128)
    ho = (h + 2 - 3) // stride + 1
    wo = (w + 2 - 3) // stride + 1
    wp = _round_up(w + 2, 8)   # halo-padded width, rounded to a sublane multiple
                               # so in-kernel reshapes are layout no-ops

    # NCHW -> NHWC (channels on the 128-lane axis); zero-pad spatial halo and
    # channels.  TODO(synk): in a full network keep activations NHWC+padded
    # between blocks so this transpose/pad is paid once, not per block.
    x_nhwc = jnp.transpose(x_nchw, (0, 2, 3, 1)).astype(jnp.float32)
    x_pad = jnp.pad(x_nhwc, ((0, 0), (1, 1), (1, wp - w - 1), (0, cin_p - cin)))

    to_rows = tile_rows or _pick_tile_rows(ho, wo, wp, stride, cin_p, ch_p, cout_p)
    assert ho % to_rows == 0
    n_tiles = ho // to_rows
    blk_rows = to_rows * stride       # padded-input rows owned by one tile
    halo = 3 - stride
    ti_rows = blk_rows + halo

    kernel = functools.partial(
        _inv_res_kernel, stride=stride, do_expand=do_expand, use_res=use_res,
        height=h, width=w, mxu_dtype=mxu_dtype)

    x_spec_cur = pl.BlockSpec((1, blk_rows, wp, cin_p), lambda i, t: (i, t, 0, 0))
    x_spec_nxt = pl.BlockSpec((1, blk_rows, wp, cin_p), lambda i, t: (i, t + 1, 0, 0))

    def w_spec(arr):
        shape = arr.shape
        return pl.BlockSpec(shape, lambda i, t: (0,) * len(shape))  # resident

    w1, s1, b1 = prepared["w1"], prepared["s1"], prepared["b1"]
    wdw, s2, b2 = prepared["wdw"], prepared["s2"], prepared["b2"]
    w3, s3, b3 = prepared["w3"], prepared["s3"], prepared["b3"]

    scratch_shapes = []
    if stride == 2:
        scratch_shapes.append(pltpu.VMEM((ti_rows, wp, ch_p), jnp.float32))

    # Rough per-call VMEM need (double-buffered I/O tiles + resident weights),
    # kept under v7x's 64 MiB physical VMEM.
    tile_bytes = 4 * (2 * 2 * blk_rows * wp * cin_p + 2 * to_rows * wo * cout_p)
    weight_bytes = sum(int(a.size) * a.dtype.itemsize
                       for a in (w1, s1, b1, wdw, s2, b2, w3, s3, b3))
    scratch_bytes = 4 * ti_rows * wp * ch_p if stride == 2 else 0
    vmem_limit = int(min(max(tile_bytes + weight_bytes + scratch_bytes + (24 << 20),
                             32 << 20), 64 << 20))

    out_pad = pl.pallas_call(
        kernel,
        out_shape=jax.ShapeDtypeStruct((n, ho, wo, cout_p), jnp.float32),
        grid=(n, n_tiles),
        in_specs=[x_spec_cur, x_spec_nxt,
                  w_spec(w1), w_spec(s1), w_spec(b1),
                  w_spec(wdw), w_spec(s2), w_spec(b2),
                  w_spec(w3), w_spec(s3), w_spec(b3)],
        out_specs=pl.BlockSpec((1, to_rows, wo, cout_p), lambda i, t: (i, t, 0, 0)),
        scratch_shapes=scratch_shapes,
        compiler_params=pltpu.CompilerParams(
            dimension_semantics=("parallel", "parallel"),
            vmem_limit_bytes=vmem_limit),
        interpret=interpret,
    )(x_pad, x_pad, w1, s1, b1, wdw, s2, b2, w3, s3, b3)

    return jnp.transpose(out_pad[..., :cout], (0, 3, 1, 2))


def init_params(key, inp, oup, expand_ratio):
    """Deterministic synthetic parameters (BatchNorms folded to scale/bias)."""
    hidden = int(round(inp * expand_ratio))

    def bn(k, c):
        k1, k2, k3, k4 = jax.random.split(k, 4)
        gamma = jax.random.uniform(k1, (c,), jnp.float32, 0.5, 1.5)
        beta = 0.1 * jax.random.normal(k2, (c,), jnp.float32)
        mean = 0.1 * jax.random.normal(k3, (c,), jnp.float32)
        var = jax.random.uniform(k4, (c,), jnp.float32, 0.5, 1.5)
        scale = gamma / jnp.sqrt(var + EPS)
        return scale, beta - mean * scale

    ks = jax.random.split(key, 6)
    p = {}
    if expand_ratio != 1:
        p["w1"] = 0.2 * jax.random.normal(ks[0], (inp, hidden), jnp.float32)
        p["s1"], p["b1"] = bn(ks[1], hidden)
    p["wdw"] = 0.2 * jax.random.normal(ks[2], (9, hidden), jnp.float32)
    p["s2"], p["b2"] = bn(ks[3], hidden)
    p["w3"] = 0.2 * jax.random.normal(ks[4], (hidden, oup), jnp.float32)
    p["s3"], p["b3"] = bn(ks[5], oup)
    return p


def prepare_params(raw, inp, oup, expand_ratio, mxu_dtype=jnp.bfloat16):
    """Pad channels to lane multiples (128) and pre-cast the 1x1 weights.

    Done once (offline, like pre-transposing weights) so the per-call path only
    moves lane-dense tensors.  Depthwise weights / scale / bias stay f32 (VPU).
    """
    hidden = int(round(inp * expand_ratio))
    cin_p, ch_p, cout_p = (_round_up(c, 128) for c in (inp, hidden, oup))

    def pad2(a, r, c):
        return jnp.pad(a, ((0, r - a.shape[0]), (0, c - a.shape[1])))

    def pad1(a, c):
        return jnp.pad(a, (0, c - a.shape[0])).reshape(1, c)

    p = {"cout": oup}
    if expand_ratio != 1:
        p["w1"] = pad2(raw["w1"], cin_p, ch_p).astype(mxu_dtype)
        p["s1"] = pad1(raw["s1"], ch_p)
        p["b1"] = pad1(raw["b1"], ch_p)
    else:  # unused placeholders (stage 1 skipped at trace time)
        p["w1"] = jnp.zeros((cin_p, ch_p), mxu_dtype)
        p["s1"] = jnp.zeros((1, ch_p), jnp.float32)
        p["b1"] = jnp.zeros((1, ch_p), jnp.float32)
    p["wdw"] = pad2(raw["wdw"], 9, ch_p)
    p["s2"] = pad1(raw["s2"], ch_p)
    p["b2"] = pad1(raw["b2"], ch_p)
    p["w3"] = pad2(raw["w3"], ch_p, cout_p).astype(mxu_dtype)
    p["s3"] = pad1(raw["s3"], cout_p)
    p["b3"] = pad1(raw["b3"], cout_p)
    return p


def reference(x_nchw, raw, *, stride, expand_ratio, mxu_dtype=jnp.bfloat16):
    """Pure-JAX reference (lax convolutions), NCHW in/out.

    Mirrors the kernel's precision choice: 1x1 conv operands in mxu_dtype with
    f32 accumulation; depthwise / BN / ReLU6 / residual in f32.
    """
    n, cin, h, w = x_nchw.shape
    hidden = int(round(cin * expand_ratio))
    cout = raw["w3"].shape[1]
    dn = ("NHWC", "HWIO", "NHWC")
    x = jnp.transpose(x_nchw, (0, 2, 3, 1)).astype(jnp.float32)
    hc = x
    if expand_ratio != 1:
        w1 = raw["w1"].reshape(1, 1, cin, hidden).astype(mxu_dtype)
        hc = lax.conv_general_dilated(hc.astype(mxu_dtype), w1, (1, 1), "VALID",
                                      dimension_numbers=dn,
                                      preferred_element_type=jnp.float32)
        hc = jnp.clip(hc * raw["s1"].reshape(1, 1, 1, hidden)
                      + raw["b1"].reshape(1, 1, 1, hidden), 0.0, 6.0)
    wdw = raw["wdw"].reshape(3, 3, 1, hidden)
    hc = lax.conv_general_dilated(hc, wdw, (stride, stride), ((1, 1), (1, 1)),
                                  dimension_numbers=dn, feature_group_count=hidden)
    hc = jnp.clip(hc * raw["s2"].reshape(1, 1, 1, hidden)
                  + raw["b2"].reshape(1, 1, 1, hidden), 0.0, 6.0)
    w3 = raw["w3"].reshape(1, 1, hidden, cout).astype(mxu_dtype)
    hc = lax.conv_general_dilated(hc.astype(mxu_dtype), w3, (1, 1), "VALID",
                                  dimension_numbers=dn,
                                  preferred_element_type=jnp.float32)
    hc = hc * raw["s3"].reshape(1, 1, 1, cout) + raw["b3"].reshape(1, 1, 1, cout)
    if stride == 1 and cin == cout:
        hc = hc + x
    return jnp.transpose(hc, (0, 3, 1, 2))


if __name__ == "__main__":
    key = jax.random.PRNGKey(0)
    kx, kp, kp2 = jax.random.split(key, 3)

    # InvertedResidual(inp=4, oup=4, stride=1, expand_ratio=4): hidden_dim=16,
    # residual connection active (the spec config).
    n, cin, h, w = 2, 4, 16, 16
    oup, stride, expand_ratio = 4, 1, 4

    x = jax.random.normal(kx, (n, cin, h, w), jnp.float32)
    raw = init_params(kp, cin, oup, expand_ratio)

    # Production configuration: bf16 MXU operands, f32 accumulation.
    prepared = prepare_params(raw, cin, oup, expand_ratio, mxu_dtype=jnp.bfloat16)
    out = inverted_residual(x, prepared, stride=stride, expand_ratio=expand_ratio,
                            mxu_dtype=jnp.bfloat16)
    out = jax.block_until_ready(out)
    ref = reference(x, raw, stride=stride, expand_ratio=expand_ratio,
                    mxu_dtype=jnp.bfloat16)
    assert out.shape == ref.shape, (out.shape, ref.shape)
    err = float(jnp.max(jnp.abs(out - ref)))
    assert jnp.allclose(out, ref, rtol=2e-3, atol=2e-3), err

    # Same block with full-f32 matmuls vs. the f32 reference (tight check).
    prepared32 = prepare_params(raw, cin, oup, expand_ratio, mxu_dtype=jnp.float32)
    out32 = jax.block_until_ready(
        inverted_residual(x, prepared32, stride=stride, expand_ratio=expand_ratio,
                          mxu_dtype=jnp.float32))
    ref32 = reference(x, raw, stride=stride, expand_ratio=expand_ratio,
                      mxu_dtype=jnp.float32)
    err32 = float(jnp.max(jnp.abs(out32 - ref32)))
    assert jnp.allclose(out32, ref32, rtol=5e-4, atol=5e-4), err32

    # expand_ratio == 1 branch (no expand conv), residual active.
    raw1 = init_params(kp2, cin, oup, 1)
    prepared1 = prepare_params(raw1, cin, oup, 1, mxu_dtype=jnp.bfloat16)
    out1 = jax.block_until_ready(
        inverted_residual(x, prepared1, stride=1, expand_ratio=1,
                          mxu_dtype=jnp.bfloat16))
    ref1 = reference(x, raw1, stride=1, expand_ratio=1, mxu_dtype=jnp.bfloat16)
    err1 = float(jnp.max(jnp.abs(out1 - ref1)))
    assert jnp.allclose(out1, ref1, rtol=2e-3, atol=2e-3), err1

    print("KERNEL_OK")
</pallas_src>

<mosaic_0001>
module attributes {stable_mosaic.version = 11 : i64} {
  func.func @_inv_res_kernel(%arg0: i32, %arg1: i32, %arg2: memref<1x4x24x128xf32, #tpu.memory_space<vmem>>, %arg3: memref<1x4x24x128xf32, #tpu.memory_space<vmem>>, %arg4: memref<128x128xbf16, #tpu.memory_space<vmem>>, %arg5: memref<1x128xf32, #tpu.memory_space<vmem>>, %arg6: memref<1x128xf32, #tpu.memory_space<vmem>>, %arg7: memref<9x128xf32, #tpu.memory_space<vmem>>, %arg8: memref<1x128xf32, #tpu.memory_space<vmem>>, %arg9: memref<1x128xf32, #tpu.memory_space<vmem>>, %arg10: memref<128x128xbf16, #tpu.memory_space<vmem>>, %arg11: memref<1x128xf32, #tpu.memory_space<vmem>>, %arg12: memref<1x128xf32, #tpu.memory_space<vmem>>, %arg13: memref<1x4x16x128xf32, #tpu.memory_space<vmem>>) attributes {dimension_semantics = [#tpu.dimension_semantics<parallel>, #tpu.dimension_semantics<parallel>], iteration_bounds = array<i64: 2, 4>, scalar_prefetch = 0 : i64, scratch_operands = 0 : i64, tpu.core_type = #tpu.core_type<tc>, window_params = [{transform_indices = @transform_0, window_bounds = array<i64: 1, 4, 24, 128>}, {transform_indices = @transform_1, window_bounds = array<i64: 1, 4, 24, 128>}, {pipeline_mode = #tpu.pipeline_mode<synchronous>, transform_indices = @transform_2, window_bounds = array<i64: 128, 128>}, {pipeline_mode = #tpu.pipeline_mode<synchronous>, transform_indices = @transform_3, window_bounds = array<i64: 1, 128>}, {pipeline_mode = #tpu.pipeline_mode<synchronous>, transform_indices = @transform_4, window_bounds = array<i64: 1, 128>}, {pipeline_mode = #tpu.pipeline_mode<synchronous>, transform_indices = @transform_5, window_bounds = array<i64: 9, 128>}, {pipeline_mode = #tpu.pipeline_mode<synchronous>, transform_indices = @transform_6, window_bounds = array<i64: 1, 128>}, {pipeline_mode = #tpu.pipeline_mode<synchronous>, transform_indices = @transform_7, window_bounds = array<i64: 1, 128>}, {pipeline_mode = #tpu.pipeline_mode<synchronous>, transform_indices = @transform_8, window_bounds = array<i64: 128, 128>}, {pipeline_mode = #tpu.pipeline_mode<synchronous>, transform_indices = @transform_9, window_bounds = array<i64: 1, 128>}, {pipeline_mode = #tpu.pipeline_mode<synchronous>, transform_indices = @transform_10, window_bounds = array<i64: 1, 128>}, {transform_indices = @transform_11, window_bounds = array<i64: 1, 4, 16, 128>}]} {
    %c0 = arith.constant 0 : index
    %c0_0 = arith.constant 0 : index
    %c0_1 = arith.constant 0 : index
    %c0_2 = arith.constant 0 : index
    %0 = vector.load %arg2[%c0, %c0_0, %c0_1, %c0_2] : memref<1x4x24x128xf32, #tpu.memory_space<vmem>>, vector<1x4x24x128xf32>
    %1 = vector.shape_cast %0 : vector<1x4x24x128xf32> to vector<4x24x128xf32>
    %c0_3 = arith.constant 0 : index
    %c0_4 = arith.constant 0 : index
    %c0_5 = arith.constant 0 : index
    %c0_6 = arith.constant 0 : index
    %2 = vector.load %arg3[%c0_3, %c0_4, %c0_5, %c0_6] : memref<1x4x24x128xf32, #tpu.memory_space<vmem>>, vector<1x2x24x128xf32>
    %3 = vector.shape_cast %2 : vector<1x2x24x128xf32> to vector<2x24x128xf32>
    %4 = tpu.concatenate %1, %3 in 0 : vector<4x24x128xf32>, vector<2x24x128xf32> -> vector<6x24x128xf32>
    %5 = vector.shape_cast %4 : vector<6x24x128xf32> to vector<144x128xf32>
    %6 = arith.truncf %5 : vector<144x128xf32> to vector<144x128xbf16>
    %c0_7 = arith.constant 0 : index
    %c0_8 = arith.constant 0 : index
    %7 = vector.load %arg4[%c0_7, %c0_8] : memref<128x128xbf16, #tpu.memory_space<vmem>>, vector<128x128xbf16>
    %cst = arith.constant dense<0.000000e+00> : vector<144x128xf32>
    %8 = tpu.matmul %6, %7, %cst {dimension_numbers = #tpu.dot_dimension_numbers<[1], [0], [0], [1], [0, 0, 1, 1], [], []>} : vector<144x128xbf16>, vector<128x128xbf16>, vector<144x128xf32> -> vector<144x128xf32>
    %c0_9 = arith.constant 0 : index
    %c0_10 = arith.constant 0 : index
    %9 = vector.load %arg5[%c0_9, %c0_10] : memref<1x128xf32, #tpu.memory_space<vmem>>, vector<1x128xf32>
    %10 = vector.broadcast %9 : vector<1x128xf32> to vector<144x128xf32>
    %11 = arith.mulf %8, %10 : vector<144x128xf32>
    %c0_11 = arith.constant 0 : index
    %c0_12 = arith.constant 0 : index
    %12 = vector.load %arg6[%c0_11, %c0_12] : memref<1x128xf32, #tpu.memory_space<vmem>>, vector<1x128xf32>
    %13 = vector.broadcast %12 : vector<1x128xf32> to vector<144x128xf32>
    %14 = arith.addf %11, %13 : vector<144x128xf32>
    %cst_13 = arith.constant 0.000000e+00 : f32
    %cst_14 = arith.constant 6.000000e+00 : f32
    %15 = vector.broadcast %cst_13 : f32 to vector<144x128xf32>
    %16 = arith.maximumf %15, %14 : vector<144x128xf32>
    %17 = vector.broadcast %cst_14 : f32 to vector<144x128xf32>
    %18 = arith.minimumf %17, %16 : vector<144x128xf32>
    %19 = vector.shape_cast %18 : vector<144x128xf32> to vector<6x24x128xf32>
    %c4_i32 = arith.constant 4 : i32
    %20 = arith.muli %arg1, %c4_i32 : i32
    %21 = tpu.iota {dimensions = array<i32: 0>} : vector<6x1x1xi32>
    %22 = vector.broadcast %20 : i32 to vector<6x1x1xi32>
    %23 = arith.addi %22, %21 : vector<6x1x1xi32>
    %24 = tpu.iota {dimensions = array<i32: 1>} : vector<1x24x1xi32>
    %c1_i32 = arith.constant 1 : i32
    %25 = vector.broadcast %c1_i32 : i32 to vector<6x1x1xi32>
    %26 = arith.cmpi sge, %23, %25 : vector<6x1x1xi32>
    %c16_i32 = arith.constant 16 : i32
    %27 = vector.broadcast %c16_i32 : i32 to vector<6x1x1xi32>
    %28 = arith.cmpi sle, %23, %27 : vector<6x1x1xi32>
    %29 = arith.andi %26, %28 : vector<6x1x1xi1>
    %c1_i32_15 = arith.constant 1 : i32
    %30 = vector.broadcast %c1_i32_15 : i32 to vector<1x24x1xi32>
    %31 = arith.cmpi sge, %24, %30 : vector<1x24x1xi32>
    %32 = vector.broadcast %29 : vector<6x1x1xi1> to vector<6x24x1xi1>
    %33 = vector.broadcast %31 : vector<1x24x1xi1> to vector<6x24x1xi1>
    %34 = arith.andi %32, %33 : vector<6x24x1xi1>
    %c16_i32_16 = arith.constant 16 : i32
    %35 = vector.broadcast %c16_i32_16 : i32 to vector<1x24x1xi32>
    %36 = arith.cmpi sle, %24, %35 : vector<1x24x1xi32>
    %37 = vector.broadcast %36 : vector<1x24x1xi1> to vector<6x24x1xi1>
    %38 = arith.andi %34, %37 : vector<6x24x1xi1>
    %cst_17 = arith.constant 0.000000e+00 : f32
    %39 = vector.shape_cast %38 : vector<6x24x1xi1> to vector<6x24x1xi1>
    %40 = vector.broadcast %39 : vector<6x24x1xi1> to vector<6x24x128xi1>
    %41 = vector.broadcast %cst_17 : f32 to vector<6x24x128xf32>
    %42 = arith.select %40, %19, %41 : vector<6x24x128xi1>, vector<6x24x128xf32>
    %43 = vector.extract_strided_slice %4 {offsets = [1, 1, 0], sizes = [4, 16, 128], strides = [1, 1, 1]} : vector<6x24x128xf32> to vector<4x16x128xf32>
    %c0_18 = arith.constant 0 : index
    %c0_19 = arith.constant 0 : index
    %44 = vector.load %arg7[%c0_18, %c0_19] : memref<9x128xf32, #tpu.memory_space<vmem>>, vector<9x128xf32>
    %cst_20 = arith.constant 0.000000e+00 : f32
    %45 = vector.broadcast %cst_20 : f32 to vector<4x16x128xf32>
    %46 = vector.extract_strided_slice %42 {offsets = [0, 0, 0], sizes = [4, 16, 128], strides = [1, 1, 1]} : vector<6x24x128xf32> to vector<4x16x128xf32>
    %47 = vector.extract_strided_slice %44 {offsets = [0, 0], sizes = [1, 128], strides = [1, 1]} : vector<9x128xf32> to vector<1x128xf32>
    %48 = vector.shape_cast %47 : vector<1x128xf32> to vector<128xf32>
    %49 = vector.shape_cast %48 : vector<128xf32> to vector<1x1x128xf32>
    %50 = vector.broadcast %49 : vector<1x1x128xf32> to vector<4x16x128xf32>
    %51 = arith.mulf %46, %50 : vector<4x16x128xf32>
    %52 = arith.addf %45, %51 : vector<4x16x128xf32>
    %53 = vector.extract_strided_slice %42 {offsets = [0, 1, 0], sizes = [4, 16, 128], strides = [1, 1, 1]} : vector<6x24x128xf32> to vector<4x16x128xf32>
    %54 = vector.extract_strided_slice %44 {offsets = [1, 0], sizes = [1, 128], strides = [1, 1]} : vector<9x128xf32> to vector<1x128xf32>
    %55 = vector.shape_cast %54 : vector<1x128xf32> to vector<128xf32>
    %56 = vector.shape_cast %55 : vector<128xf32> to vector<1x1x128xf32>
    %57 = vector.broadcast %56 : vector<1x1x128xf32> to vector<4x16x128xf32>
    %58 = arith.mulf %53, %57 : vector<4x16x128xf32>
    %59 = arith.addf %52, %58 : vector<4x16x128xf32>
    %60 = vector.extract_strided_slice %42 {offsets = [0, 2, 0], sizes = [4, 16, 128], strides = [1, 1, 1]} : vector<6x24x128xf32> to vector<4x16x128xf32>
    %61 = vector.extract_strided_slice %44 {offsets = [2, 0], sizes = [1, 128], strides = [1, 1]} : vector<9x128xf32> to vector<1x128xf32>
    %62 = vector.shape_cast %61 : vector<1x128xf32> to vector<128xf32>
    %63 = vector.shape_cast %62 : vector<128xf32> to vector<1x1x128xf32>
    %64 = vector.broadcast %63 : vector<1x1x128xf32> to vector<4x16x128xf32>
    %65 = arith.mulf %60, %64 : vector<4x16x128xf32>
    %66 = arith.addf %59, %65 : vector<4x16x128xf32>
    %67 = vector.extract_strided_slice %42 {offsets = [1, 0, 0], sizes = [4, 16, 128], strides = [1, 1, 1]} : vector<6x24x128xf32> to vector<4x16x128xf32>
    %68 = vector.extract_strided_slice %44 {offsets = [3, 0], sizes = [1, 128], strides = [1, 1]} : vector<9x128xf32> to vector<1x128xf32>
    %69 = vector.shape_cast %68 : vector<1x128xf32> to vector<128xf32>
    %70 = vector.shape_cast %69 : vector<128xf32> to vector<1x1x128xf32>
    %71 = vector.broadcast %70 : vector<1x1x128xf32> to vector<4x16x128xf32>
    %72 = arith.mulf %67, %71 : vector<4x16x128xf32>
    %73 = arith.addf %66, %72 : vector<4x16x128xf32>
    %74 = vector.extract_strided_slice %42 {offsets = [1, 1, 0], sizes = [4, 16, 128], strides = [1, 1, 1]} : vector<6x24x128xf32> to vector<4x16x128xf32>
    %75 = vector.extract_strided_slice %44 {offsets = [4, 0], sizes = [1, 128], strides = [1, 1]} : vector<9x128xf32> to vector<1x128xf32>
    %76 = vector.shape_cast %75 : vector<1x128xf32> to vector<128xf32>
    %77 = vector.shape_cast %76 : vector<128xf32> to vector<1x1x128xf32>
    %78 = vector.broadcast %77 : vector<1x1x128xf32> to vector<4x16x128xf32>
    %79 = arith.mulf %74, %78 : vector<4x16x128xf32>
    %80 = arith.addf %73, %79 : vector<4x16x128xf32>
    %81 = vector.extract_strided_slice %42 {offsets = [1, 2, 0], sizes = [4, 16, 128], strides = [1, 1, 1]} : vector<6x24x128xf32> to vector<4x16x128xf32>
    %82 = vector.extract_strided_slice %44 {offsets = [5, 0], sizes = [1, 128], strides = [1, 1]} : vector<9x128xf32> to vector<1x128xf32>
    %83 = vector.shape_cast %82 : vector<1x128xf32> to vector<128xf32>
    %84 = vector.shape_cast %83 : vector<128xf32> to vector<1x1x128xf32>
    %85 = vector.broadcast %84 : vector<1x1x128xf32> to vector<4x16x128xf32>
    %86 = arith.mulf %81, %85 : vector<4x16x128xf32>
    %87 = arith.addf %80, %86 : vector<4x16x128xf32>
    %88 = vector.extract_strided_slice %42 {offsets = [2, 0, 0], sizes = [4, 16, 128], strides = [1, 1, 1]} : vector<6x24x128xf32> to vector<4x16x128xf32>
    %89 = vector.extract_strided_slice %44 {offsets = [6, 0], sizes = [1, 128], strides = [1, 1]} : vector<9x128xf32> to vector<1x128xf32>
    %90 = vector.shape_cast %89 : vector<1x128xf32> to vector<128xf32>
    %91 = vector.shape_cast %90 : vector<128xf32> to vector<1x1x128xf32>
    %92 = vector.broadcast %91 : vector<1x1x128xf32> to vector<4x16x128xf32>
    %93 = arith.mulf %88, %92 : vector<4x16x128xf32>
    %94 = arith.addf %87, %93 : vector<4x16x128xf32>
    %95 = vector.extract_strided_slice %42 {offsets = [2, 1, 0], sizes = [4, 16, 128], strides = [1, 1, 1]} : vector<6x24x128xf32> to vector<4x16x128xf32>
    %96 = vector.extract_strided_slice %44 {offsets = [7, 0], sizes = [1, 128], strides = [1, 1]} : vector<9x128xf32> to vector<1x128xf32>
    %97 = vector.shape_cast %96 : vector<1x128xf32> to vector<128xf32>
    %98 = vector.shape_cast %97 : vector<128xf32> to vector<1x1x128xf32>
    %99 = vector.broadcast %98 : vector<1x1x128xf32> to vector<4x16x128xf32>
    %100 = arith.mulf %95, %99 : vector<4x16x128xf32>
    %101 = arith.addf %94, %100 : vector<4x16x128xf32>
    %102 = vector.extract_strided_slice %42 {offsets = [2, 2, 0], sizes = [4, 16, 128], strides = [1, 1, 1]} : vector<6x24x128xf32> to vector<4x16x128xf32>
    %103 = vector.extract_strided_slice %44 {offsets = [8, 0], sizes = [1, 128], strides = [1, 1]} : vector<9x128xf32> to vector<1x128xf32>
    %104 = vector.shape_cast %103 : vector<1x128xf32> to vector<128xf32>
    %105 = vector.shape_cast %104 : vector<128xf32> to vector<1x1x128xf32>
    %106 = vector.broadcast %105 : vector<1x1x128xf32> to vector<4x16x128xf32>
    %107 = arith.mulf %102, %106 : vector<4x16x128xf32>
    %108 = arith.addf %101, %107 : vector<4x16x128xf32>
    %c0_21 = arith.constant 0 : index
    %c0_22 = arith.constant 0 : index
    %109 = vector.load %arg8[%c0_21, %c0_22] : memref<1x128xf32, #tpu.memory_space<vmem>>, vector<1x128xf32>
    %110 = vector.shape_cast %109 : vector<1x128xf32> to vector<1x1x128xf32>
    %111 = vector.broadcast %110 : vector<1x1x128xf32> to vector<4x16x128xf32>
    %112 = arith.mulf %108, %111 : vector<4x16x128xf32>
    %c0_23 = arith.constant 0 : index
    %c0_24 = arith.constant 0 : index
    %113 = vector.load %arg9[%c0_23, %c0_24] : memref<1x128xf32, #tpu.memory_space<vmem>>, vector<1x128xf32>
    %114 = vector.shape_cast %113 : vector<1x128xf32> to vector<1x1x128xf32>
    %115 = vector.broadcast %114 : vector<1x1x128xf32> to vector<4x16x128xf32>
    %116 = arith.addf %112, %115 : vector<4x16x128xf32>
    %cst_25 = arith.constant 0.000000e+00 : f32
    %cst_26 = arith.constant 6.000000e+00 : f32
    %117 = vector.broadcast %cst_25 : f32 to vector<4x16x128xf32>
    %118 = arith.maximumf %117, %116 : vector<4x16x128xf32>
    %119 = vector.broadcast %cst_26 : f32 to vector<4x16x128xf32>
    %120 = arith.minimumf %119, %118 : vector<4x16x128xf32>
    %121 = vector.shape_cast %120 : vector<4x16x128xf32> to vector<64x128xf32>
    %122 = arith.truncf %121 : vector<64x128xf32> to vector<64x128xbf16>
    %c0_27 = arith.constant 0 : index
    %c0_28 = arith.constant 0 : index
    %123 = vector.load %arg10[%c0_27, %c0_28] : memref<128x128xbf16, #tpu.memory_space<vmem>>, vector<128x128xbf16>
    %cst_29 = arith.constant dense<0.000000e+00> : vector<64x128xf32>
    %124 = tpu.matmul %122, %123, %cst_29 {dimension_numbers = #tpu.dot_dimension_numbers<[1], [0], [0], [1], [0, 0, 1, 1], [], []>} : vector<64x128xbf16>, vector<128x128xbf16>, vector<64x128xf32> -> vector<64x128xf32>
    %c0_30 = arith.constant 0 : index
    %c0_31 = arith.constant 0 : index
    %125 = vector.load %arg11[%c0_30, %c0_31] : memref<1x128xf32, #tpu.memory_space<vmem>>, vector<1x128xf32>
    %126 = vector.broadcast %125 : vector<1x128xf32> to vector<64x128xf32>
    %127 = arith.mulf %124, %126 : vector<64x128xf32>
    %c0_32 = arith.constant 0 : index
    %c0_33 = arith.constant 0 : index
    %128 = vector.load %arg12[%c0_32, %c0_33] : memref<1x128xf32, #tpu.memory_space<vmem>>, vector<1x128xf32>
    %129 = vector.broadcast %128 : vector<1x128xf32> to vector<64x128xf32>
    %130 = arith.addf %127, %129 : vector<64x128xf32>
    %131 = vector.shape_cast %130 : vector<64x128xf32> to vector<4x16x128xf32>
    %132 = arith.addf %131, %43 : vector<4x16x128xf32>
    %c0_34 = arith.constant 0 : index
    %c0_35 = arith.constant 0 : index
    %c0_36 = arith.constant 0 : index
    %c0_37 = arith.constant 0 : index
    %133 = vector.load %arg13[%c0_34, %c0_35, %c0_36, %c0_37] : memref<1x4x16x128xf32, #tpu.memory_space<vmem>>, vector<1x4x16x128xf32>
    %134 = vector.shape_cast %133 : vector<1x4x16x128xf32> to vector<4x16x128xf32>
    %135 = vector.shape_cast %132 : vector<4x16x128xf32> to vector<1x4x16x128xf32>
    tpu.vector_store %arg13[%c0_34, %c0_35, %c0_36, %c0_37], %135 {strides = array<i32>} : memref<1x4x16x128xf32, #tpu.memory_space<vmem>>, vector<1x4x16x128xf32>,
    return
  }
  func.func @transform_0(%arg0: i32, %arg1: i32) -> (i32, i32, i32, i32) {
    %c0_i32 = arith.constant 0 : i32
    %c0_i32_0 = arith.constant 0 : i32
    %c0_i32_1 = arith.constant 0 : i32
    return %arg0, %arg1, %c0_i32, %c0_i32_0 : i32, i32, i32, i32
  }
  func.func @transform_1(%arg0: i32, %arg1: i32) -> (i32, i32, i32, i32) {
    %c1_i32 = arith.constant 1 : i32
    %0 = arith.addi %arg1, %c1_i32 : i32
    %c0_i32 = arith.constant 0 : i32
    %c0_i32_0 = arith.constant 0 : i32
    %c0_i32_1 = arith.constant 0 : i32
    return %arg0, %0, %c0_i32, %c0_i32_0 : i32, i32, i32, i32
  }
  func.func @transform_2(%arg0: i32, %arg1: i32) -> (i32, i32) {
    %c0_i32 = arith.constant 0 : i32
    %c0_i32_0 = arith.constant 0 : i32
    %c0_i32_1 = arith.constant 0 : i32
    return %c0_i32, %c0_i32_0 : i32, i32
  }
  func.func @transform_3(%arg0: i32, %arg1: i32) -> (i32, i32) {
    %c0_i32 = arith.constant 0 : i32
    %c0_i32_0 = arith.constant 0 : i32
    %c0_i32_1 = arith.constant 0 : i32
    return %c0_i32, %c0_i32_0 : i32, i32
  }
  func.func @transform_4(%arg0: i32, %arg1: i32) -> (i32, i32) {
    %c0_i32 = arith.constant 0 : i32
    %c0_i32_0 = arith.constant 0 : i32
    %c0_i32_1 = arith.constant 0 : i32
    return %c0_i32, %c0_i32_0 : i32, i32
  }
  func.func @transform_5(%arg0: i32, %arg1: i32) -> (i32, i32) {
    %c0_i32 = arith.constant 0 : i32
    %c0_i32_0 = arith.constant 0 : i32
    %c0_i32_1 = arith.constant 0 : i32
    return %c0_i32, %c0_i32_0 : i32, i32
  }
  func.func @transform_6(%arg0: i32, %arg1: i32) -> (i32, i32) {
    %c0_i32 = arith.constant 0 : i32
    %c0_i32_0 = arith.constant 0 : i32
    %c0_i32_1 = arith.constant 0 : i32
    return %c0_i32, %c0_i32_0 : i32, i32
  }
  func.func @transform_7(%arg0: i32, %arg1: i32) -> (i32, i32) {
    %c0_i32 = arith.constant 0 : i32
    %c0_i32_0 = arith.constant 0 : i32
    %c0_i32_1 = arith.constant 0 : i32
    return %c0_i32, %c0_i32_0 : i32, i32
  }
  func.func @transform_8(%arg0: i32, %arg1: i32) -> (i32, i32) {
    %c0_i32 = arith.constant 0 : i32
    %c0_i32_0 = arith.constant 0 : i32
    %c0_i32_1 = arith.constant 0 : i32
    return %c0_i32, %c0_i32_0 : i32, i32
  }
  func.func @transform_9(%arg0: i32, %arg1: i32) -> (i32, i32) {
    %c0_i32 = arith.constant 0 : i32
    %c0_i32_0 = arith.constant 0 : i32
    %c0_i32_1 = arith.constant 0 : i32
    return %c0_i32, %c0_i32_0 : i32, i32
  }
  func.func @transform_10(%arg0: i32, %arg1: i32) -> (i32, i32) {
    %c0_i32 = arith.constant 0 : i32
    %c0_i32_0 = arith.constant 0 : i32
    %c0_i32_1 = arith.constant 0 : i32
    return %c0_i32, %c0_i32_0 : i32, i32
  }
  func.func @transform_11(%arg0: i32, %arg1: i32) -> (i32, i32, i32, i32) {
    %c0_i32 = arith.constant 0 : i32
    %c0_i32_0 = arith.constant 0 : i32
    %c0_i32_1 = arith.constant 0 : i32
    return %arg0, %arg1, %c0_i32, %c0_i32_0 : i32, i32, i32, i32
  }
}

</mosaic_0001>

<bundles_post_ra>
// kernel: tpu_custom_call.1
= control target key start
LH: loop header
LB: loop body
LE: loop exit
PB: predicated region body
PF: predicated region fallthrough
CT: control target
= control target key end

     0   :  { %s3461_s0 = inlined_call_operand.hbm [shape: f32[2,18,24,128], index: 0, kind: input, shape index: {}]   ;;  %s3462_s1 = inlined_call_operand.hbm [shape: f32[2,18,24,128], index: 1, kind: input, shape index: {}]   ;;  %s3463_s2 = inlined_call_operand.hbm [shape: bf16[128,128], index: 2, kind: input, shape index: {}]   ;;  %s3464_s3 = inlined_call_operand.vmem [shape: f32[1,128], index: 3, kind: input, shape index: {}]   ;;  %s3465_s4 = inlined_call_operand.vmem [shape: f32[1,128], index: 4, kind: input, shape index: {}]   ;;  %s3466_s5 = inlined_call_operand.hbm [shape: f32[9,128], index: 5, kind: input, shape index: {}]   ;;  %s3467_s6 = inlined_call_operand.vmem [shape: f32[1,128], index: 6, kind: input, shape index: {}]   ;;  %s3468_s7 = inlined_call_operand.vmem [shape: f32[1,128], index: 7, kind: input, shape index: {}]   ;;  %s3469_s8 = inlined_call_operand.hbm [shape: bf16[128,128], index: 8, kind: input, shape index: {}]   ;;  %s3470_s9 = inlined_call_operand.vmem [shape: f32[1,128], index: 9, kind: input, shape index: {}]   ;;  %s3471_s10 = inlined_call_operand.vmem [shape: f32[1,128], index: 10, kind: input, shape index: {}]   ;;  %s3472_s11 = inlined_call_operand.hbm [shape: f32[2,16,16,128], index: 11, kind: output, shape index: {}]  }
   0x1   :  { %3498 = sst [smem:[#allocation40_spill]] %s3464_s3 }
   0x2   :  { %3499 = sst [smem:[#allocation41_spill]] %s3465_s4 }
   0x3   :  { %3500 = sst [smem:[#allocation42_spill]] %s3466_s5 }
   0x4   :  { %3501 = sst [smem:[#allocation43_spill]] %s3467_s6 }
   0x5   :  { %3502 = sst [smem:[#allocation44_spill]] %s3468_s7 }
   0x6   :  { %3503 = sst [smem:[#allocation45_spill]] %s3470_s9 }
   0x7   :  { %3504 = sst [smem:[#allocation46_spill]] %s3471_s10 }
   0x8   :  { %3505 = sst [smem:[#allocation47_spill]] %s3472_s11 }
   0x9   :  { %16 = vsyncpa [#allocation3], 0 }
   0xa   :  { %18 = vsyncpa [#allocation3 + $0x1], 0 }
   0xb   :  { %19 = vsyncpa [#allocation6], 0 }
   0xc   :  { %21 = vsyncpa [#allocation6 + $0x1], 0 }
   0xd   :  { %22 = vsyncpa [#allocation9], 0 }
   0xe   :  { %23 = vsyncpa [#allocation4], 0 }
   0xf   :  { %25 = vsyncpa [#allocation4 + $0x1], 0  ;;  %s2411_s17 = smov 0   ;;  %s2413_s18 = smov 0  }
  0x10   :  { %s2415_s19 = smov 0   ;;  %s2417_s20 = smov 0  }
  0x11   :  { %s2419_s21 = smov 0   ;;  %s2421_s22 = smov 0  }
  0x12   :  { %s2423_s23 = smov 0   ;;  %s2425_s24 = smov 0  }
  0x13   :  { %s2427_s25 = smov 0   ;;  %s2429_s26 = smov 0  }
  0x14   :  { %s2431_s27 = smov 0  }
  0x15 LB: > { %3506 = sst [smem:[#allocation17_spill]] %s2298_s18  ;;  %s2467_s28 = sadd.s32 4294967295, %s2334_s27   ;;  %s2334_s27 = sphi %s2431_s27, %s31_s27   ;;  %s2330_s26 = sphi %s2429_s26, %s3619_s26   ;;  %s2326_s25 = sphi %s2427_s25, %s3618_s25   ;;  %s2322_s24 = sphi %s2425_s24, %s3617_s24   ;;  %s2318_s23 = sphi %s2423_s23, %s3616_s23   ;;  %s2314_s22 = sphi %s2421_s22, %s3615_s22   ;;  %s2310_s21 = sphi %s2419_s21, %s3614_s21   ;;  %s2306_s20 = sphi %s2417_s20, %s3613_s20   ;;  %s2302_s19 = sphi %s2415_s19, %s3612_s19   ;;  %s2298_s18 = sphi %s2413_s18, %s3611_s18   ;;  %s2294_s17 = sphi %s2411_s17, %s3606_s17  }
  0x16   : > { %3507 = sst [smem:[#allocation18_spill]] %s2306_s20  ;;  %s40_s30 = sadd.s32 1, %s2326_s25 }
  0x17   : > { %3508 = sst [smem:[#allocation19_spill]] %s2318_s23  ;;  %s43_s12 = sadd.s32 1, %s2330_s26 }
  0x18   : > { %3509 = sst [smem:[#allocation20_spill]] %s2322_s24  ;;  %p41_p0 = scmp.ge.s32.totalorder %s40_s30, 4 }
  0x19   : > { %3510 = sst [smem:[#allocation21_spill]] %s2467_s28  ;;  %s52_s13 = sadd.s32 1, %s2314_s22 }
  0x1a   : > { %p3476_p1 = scmp.ne.s32.totalorder %s2314_s22, %s2310_s21  ;;  %p60_p2 = scmp.eq.s32.totalorder %s2334_s27, 0 }
  0x1b   : > { %s2476_s14 = scalar_select %p41_p0, 0, %s40_s30  }
  0x1c   : > { %s3621_s12 = smov (!%p41_p0, %s43_s12), %s2330_s26  ;;  %p2486_p3 = por %p60_p2, %p3476_p1 }
  0x1d   : > { %3511 = sst [smem:[#allocation22_spill]] %s2476_s14  ;;  %s48_s15 = ssub.s32 %s2326_s25, %s2476_s14 }
  0x1e   : > { %p45_p4 = scmp.ge.s32.totalorder %s3621_s12, 2  ;;  %p3475_p5 = scmp.ne.s32.totalorder %s2310_s21, %s2306_s20 }
  0x1f   : > { %p66_p6 = scmp.eq.s32.totalorder %s2467_s28, 0  ;;  %s76_s29 = sadd.s32 1, %s2476_s14 }
  0x20   : > { %s3623_s12 = smov (%p45_p4, %s3621_s12), 0  ;;  %s78_s24 = ssub.s32 %s40_s30, %s76_s29 }
  0x21   : > { %3513 = sst [smem:[#allocation23_spill]] %s3623_s12  ;;  %p2501_p7 = por %p66_p6, %p3475_p5 }
  0x22   : > { %s47_s10 = ssub.s32 %s2330_s26, %s3623_s12  ;;  %s82_s9 = sadd.s32 1, %s2302_s19 }
  0x23   : > { %s3514_s11 = scalar_select %p2501_p7, 1, 0 }
  0x24   : > { %s49_s14 = sor.u32 %s48_s15, %s47_s10  ;;  %s79_s7 = sor.u32 %s78_s24, %s47_s10 }
  0x25   : > { %p50_p8 = scmp.eq.s32.totalorder %s49_s14, 0  ;;  %p80_p9 = scmp.eq.s32.totalorder %s79_s7, 0 }
  0x26   : > { %p89_p10 = scmp.ne.s32.totalorder %s2302_s19, %s2298_s18  ;;  %p95_p11 = scmp.ne.s32.totalorder %s2298_s18, %s2294_s17 }
  0x27   : > { %s2513_s6 = scalar_select %p50_p8, %s2314_s22, %s52_s13  }
  0x28   : > { %s2516_s4 = scalar_select %p80_p9, %s2302_s19, %s82_s9  }
  0x29   : > { %3515 = sst [smem:[#allocation24_spill]] %s2513_s6  ;;  %p2520_p12 = por %p89_p10, %p60_p2 }
  0x2a   : > { %3516 = sst [smem:[#allocation25_spill]] %s2516_s4  ;;  %p2526_p13 = por %p95_p11, %p66_p6 }
  0x2b   : > { %p310_p0 = scmp.eq.s32.totalorder %s2467_s28, 7  ;;  %s3520_s10 = sadd.s32 4294967294, %s2334_s27  }
  0x2c   : > { %s3518_s30 = scalar_select %p2526_p13, 1, 0 }
  0x2d   : > { %p316_p4 = scmp.eq.s32.totalorder %s3520_s10, 7  ;;  %p1735_p5 = scmp.ge.s32.totalorder %s2334_s27, 1 }
  0x2e   : > { %3519 = sst [smem:[#allocation26_spill]] %s3518_s30  ;;  %p323_p1 = scmp.lt.s32.totalorder %s2334_s27, 9 }
  0x2f   : > { %p3521_p8 = scmp.ne.s32.totalorder %s2314_s22, %s2310_s21  ;;  %p3524_p9 = scmp.ne.s32.totalorder %s2310_s21, %s2306_s20 }
  0x30   : > { %p2549_p10 = pnand %p1735_p5, %p323_p1  ;;  %s3528_s5 = sld [smem:[#allocation42_spill]] }
  0x31   : > { %p2538_p7 = por %p310_p0, %p3521_p8  ;;  %p2545_p2 = por %p316_p4, %p3524_p9 }
  0x32   : > { %p1889_p11 = pneg %p2549_p10  ;;  %s2336_s15 = smov [#allocation8]  }
  0x33   : > { %s3522_s7 = scalar_select %p2538_p7, 1, 0 }
  0x34   : > { %s3525_s9 = scalar_select %p2545_p2, 1, 0 }
  0x35   : > { %3523 = sst [smem:[#allocation27_spill]] %s3522_s7  ;;  %s356_s10 = sshll.u32 %s2336_s15, 4  ;;  %s357_s10 = int_to_ptr.vmem [resolvable:$true] %s356_s10 }
  0x36   : > { %3526 = sst [smem:[#allocation28_spill]] %s3525_s9  ;;  %s354_s14 = sshll.u32 %s3528_s5, 4  ;;  %s355_s14 = int_to_ptr.hbm [resolvable:$true] %s354_s14 }
  0x37   : > { %p2560_p0 = pnand %p1889_p11, %p66_p6  ;;  %s2337_s6 = smov 128  }
  0x38   : > { %s2338_s4 = smov 8   ;;  %s334_s5 = sshll.u32 %s3463_s2, 4  ;;  %s335_s5 = int_to_ptr.hbm [resolvable:$true] %s334_s5 }
  0x39   : > { %1895 = dma.hbm_to_vmem [thread:$0]  (!%p2560_p0), %s355_s14, 256, %s357_s10, [#allocation9], %s2337_s6, %s2337_s6, %s2338_s4  }
  0x3a   : > { %s2339_s9 = smov [#allocation7]   ;;  %s374_s3 = sshll.u32 %s3469_s8, 4  ;;  %s375_s3 = int_to_ptr.hbm [resolvable:$true] %s374_s3 }
  0x3b   : > { %s336_s15 = sshll.u32 %s2339_s9, 4  ;;  %s2340_s23 = smov 64   ;;  %s337_s15 = int_to_ptr.vmem [resolvable:$true] %s336_s15 }
  0x3c   : > { %s2341_s30 = smov 4   ;;  %s2342_s18 = smov [#allocation10]  }
  0x3d   : > { %1892 = dma.hbm_to_vmem [thread:$0]  (!%p2560_p0), %s335_s5, 1024, %s337_s15, [#allocation6], %s2340_s23, %s2340_s23, %s2341_s30  }
  0x3e   : > { %s376_s28 = sshll.u32 %s2342_s18, 4  ;;  %p1739_p1 = scmp.ge.s32.totalorder %s2334_s27, 8  ;;  %s377_s28 = int_to_ptr.vmem [resolvable:$true] %s376_s28 }
  0x3f   : > { %1898 = dma.hbm_to_vmem [thread:$0]  (!%p2560_p0), %s375_s3, 1024, %s377_s28, [#allocation9], %s2340_s23, %s2340_s23, %s2341_s30  }
  0x40   : > { %392 = sbr.rel (%p1739_p1) target bundleno = 137 (0x89), region = 52 }
  0x45   : > { %395 = sbr.rel (!%p2486_p3) target bundleno = 94 (0x5e), region = 56  ;;  %s396_s4 = sand.u32 (%p2486_p3), 1, %s2314_s22  }
  0x46   : > { %s1867_s6 = smul.u32 (%p2486_p3), 96, %s396_s4  ;;  %s2580_s20 = scalar_lea.sflag (%p2486_p3), [#allocation3], %s396_s4 }
  0x47   : > { %s1868_s7 = smul.u32 (%p2486_p3), 12, %s2326_s25  ;;  %s2131_s15 = scalar_lea.hbm (%p2486_p3), %s3461_s0, 864 }
  0x48   : > { %s400_s5 = scalar_lea.vmem (%p2486_p3), [#allocation2], %s1867_s6  ;;  %s1869_s9 = smul.u32 (%p2486_p3), 54, %s2330_s26 }
  0x49   : > { %s2584_s18 = sshll.u32 (%p2486_p3), %s400_s5, 4  ;;  %s421_s18 = int_to_ptr.vmem [resolvable:$true] %s2584_s18 }
  0x4a   : > { %s413_s3 = sadd.s32 %s1869_s9, %s1868_s7 }
  0x4b   : > { %s1745_s23 = sshll.u32 %s413_s3, 3 }
  0x4c   : > { %s415_s16 = scalar_lea.hbm %s3461_s0, %s1745_s23 }
  0x4d   : > { %s418_s30 = sshll.u32 %s415_s16, 4  ;;  %s419_s30 = int_to_ptr.hbm [resolvable:$true] %s418_s30 }
  0x4e   : > { %s2120_s14 = sshra.s32 %s419_s30, 4  ;;  %s2121_s14 = int_to_ptr.hbm [resolvable:$true] %s2120_s14 }
  0x4f   : > { %s2127_s10 = scalar_lea.hbm %s2121_s14, 96 }
  0x50   : > { %p2128_p3 = scmp.ne.s32.totalorder %s2121_s14, %s2127_s10  ;;  %p2133_p5 = scmp.lt.s32.totalorder %s2131_s15, %s2127_s10 }
  0x52   : > { %p2135_p4 = pnand %p2133_p5, %p2128_p3 }
  0x54   : > { %2138 = shalt.err (!%p2135_p4)
}
  0x55   : > { %s2139_s4 = sshra.s32 %s421_s18, 4  ;;  %s2343_s5 = smov [#allocation2]   ;;  %s2140_s4 = int_to_ptr.vmem [resolvable:$true] %s2139_s4 }
  0x56   : > { %s2146_s6 = scalar_lea.vmem %s2140_s4, 96  ;;  %s2150_s7 = scalar_lea.vmem %s2343_s5, 192 }
  0x57   : > { %p2147_p8 = scmp.ne.s32.totalorder %s2140_s4, %s2146_s6  ;;  %p2152_p9 = scmp.lt.s32.totalorder %s2150_s7, %s2146_s6 }
  0x59   : > { %p2154_p11 = pnand %p2152_p9, %p2147_p8 }
  0x5b   : > { %2157 = shalt.err (!%p2154_p11)
}
  0x5c   : > { %s2344_s9 = smov 128   ;;  %s2345_s3 = smov 8  }
  0x5d   : > { %426 = dma.hbm_to_vmem [thread:$0]  %s419_s30, 1536, %s421_s18, %s2580_s20, %s2344_s9, %s2344_s9, %s2345_s3  }
  0x5e PF: > { %429 = sbr.rel (!%p2520_p12) target bundleno = 137 (0x89), region = 60  ;;  %s430_s23 = sand.u32 (%p2520_p12), 1, %s2334_s27  }
  0x5f   : > { %s432_s28 = sand.u32 (%p2520_p12), 1, %s2302_s19   ;;  %s1832_s16 = sshll.u32 (%p2520_p12), %s2326_s25, 2 }
  0x60   : > { %s1870_s12 = smul.u32 (%p2520_p12), 96, %s432_s28  ;;  %s1833_s14 = sadd.s32 (%p2520_p12), 4, %s1832_s16 }
  0x61   : > { %s437_s10 = ssub.s32 (%p2520_p12), 18, %s1833_s14  ;;  %s2603_s4 = scalar_lea.sflag (%p2520_p12), [#allocation6], %s430_s23 }
  0x62   : > { %p438_p0 = scmp.lt.s32.totalorder (%p2520_p12), %s437_s10, 4  ;;  %s434_s20 = scalar_lea.vmem (%p2520_p12), [#allocation5], %s1870_s12 }
  0x64   : > { %s3625_s10 = smov (!%p438_p0, %s437_s10), 4 }
  0x65   : > { %s1750_s24 = smul.u32 24, %s3625_s10 }
  0x67   : > { %s442_s13 = ssub.s32 96, %s1750_s24 }
  0x68   : > { %s443_s15 = sshll.u32 %s442_s13, 4 }
  0x69   : > { %444 = vsyncadd %s2603_s4, %s443_s15  ;;  %s1630_s29 = smul.u32 12, %s2326_s25  ;;  %s2608_s30 = sshll.u32 %s434_s20, 4  ;;  %s456_s30 = int_to_ptr.vmem [resolvable:$true] %s2608_s30 }
  0x6a   : > { %s1631_s18 = smul.u32 54, %s2330_s26  ;;  %p2610_p12 = scmp.ne.s32.totalorder %s1750_s24, 0 }
  0x6b   : > { %s2615_s9 = smul.u32 384, %s3625_s10 }
  0x6c   : > { %s1632_s5 = sadd.s32 %s1631_s18, %s1630_s29  ;;  %s2170_s18 = scalar_lea.hbm %s3462_s1, 864 }
  0x6d   : > { %s1752_s7 = sshll.u32 %s1632_s5, 3  ;;  %s2161_s24 = sshrl.u32 %s2615_s9, 4 }
  0x6e   : > { %s1634_s28 = scalar_lea.hbm %s3462_s1, %s1752_s7  ;;  %s2197_s13 = sshll.u32 %s2161_s24, 4 }
  0x6f   : > { %s1635_s12 = scalar_lea.hbm %s1634_s28, 96  ;;  %p2163_p1 = scmp.ne.s32.totalorder %s2197_s13, %s2615_s9 }
  0x70   : > { %s2620_s16 = sshll.u32 %s1635_s12, 4  ;;  %s2164_s10 = sadd.s32 1, %s2161_s24  ;;  %s454_s16 = int_to_ptr.hbm [resolvable:$true] %s2620_s16 }
  0x71   : > { %s2159_s14 = sshra.s32 %s454_s16, 4  ;;  %s3627_s10 = smov (!%p2163_p1, %s2164_s10), %s2161_s24  ;;  %s2160_s14 = int_to_ptr.hbm [resolvable:$true] %s2159_s14 }
  0x72   : > { %s2166_s15 = scalar_lea.hbm %s2160_s14, %s3627_s10 }
  0x73   : > { %p2167_p3 = scmp.ne.s32.totalorder %s2160_s14, %s2166_s15  ;;  %p2172_p8 = scmp.lt.s32.totalorder %s2170_s18, %s2166_s15 }
  0x75   : > { %p2168_p5 = pnand %p2167_p3, %p2610_p12 }
  0x77   : > { %p2169_p4 = pneg %p2168_p5 }
  0x79   : > { %p2174_p9 = pnand %p2172_p8, %p2169_p4 }
  0x7b   : > { %2177 = shalt.err (!%p2174_p9)
}
  0x7c   : > { %s2178_s5 = sshra.s32 %s456_s30, 4  ;;  %s2346_s3 = smov [#allocation5]   ;;  %s2179_s5 = int_to_ptr.vmem [resolvable:$true] %s2178_s5 }
  0x7d   : > { %s2185_s7 = scalar_lea.vmem %s2179_s5, %s3627_s10  ;;  %s2189_s23 = scalar_lea.vmem %s2346_s3, 192 }
  0x7e   : > { %p2186_p11 = scmp.ne.s32.totalorder %s2179_s5, %s2185_s7  ;;  %p2191_p3 = scmp.lt.s32.totalorder %s2189_s23, %s2185_s7 }
  0x80   : > { %p2187_p0 = pnand %p2186_p11, %p2610_p12 }
  0x82   : > { %p2188_p1 = pneg %p2187_p0 }
  0x84   : > { %p2193_p5 = pnand %p2191_p3, %p2188_p1 }
  0x86   : > { %2196 = shalt.err (!%p2193_p5)
}
  0x87   : > { %s2347_s28 = smov 128   ;;  %s2348_s12 = smov 8  }
  0x88   : > { %461 = dma.hbm_to_vmem [thread:$0]  (%p2610_p12), %s454_s16, %s2615_s9, %s456_s30, %s2603_s4, %s2347_s28, %s2347_s28, %s2348_s12  }
  0x89 PF: > { %467 = sbr.rel (%p2549_p10) target bundleno = 607 (0x25f), region = 64 }
  0x8e   : > { %s2647_s14 = sand.u32 1, %s2310_s21   ;;  %p3531_p4 = scmp.ne.s32.totalorder %s3514_s11, 0 }
  0x8f   : > { %s1871_s24 = smul.u32 96, %s2647_s14  ;;  %s470_s13 = scalar_lea.sflag [#allocation3], %s2647_s14 }
  0x91   : > { %s2651_s10 = scalar_lea.vmem [#allocation2], %s1871_s24 }
  0x92   : > { %2271 = dma.done.wait (%p3531_p4), %s470_s13, 1536  }
  0x93   : > { %2273 = vsyncadd (%p3531_p4), %s470_s13, 4294965760  ;;  %s3532_s4 = sld [smem:[#allocation21_spill]] }
  0x94   : > { %s3533_s30 = sld [smem:[#allocation17_spill]] }
  0x99   : > { %s479_s17 = sand.u32 1, %s3532_s4  }
  0x9a   : > { %s481_s9 = sand.u32 1, %s3533_s30   ;;  %s480_s15 = scalar_lea.sflag [#allocation6], %s479_s17 }
  0x9b   : > { %s1872_s16 = smul.u32 96, %s481_s9 }
  0x9d   : > { %s2659_s20 = scalar_lea.vmem [#allocation5], %s1872_s16 }
  0x9e   : > { %2275 = dma.done.wait (%p2526_p13), %s480_s15, 1536  }
  0x9f   : > { %2277 = vsyncadd (%p2526_p13), %s480_s15, 4294965760 }
  0xa0   : > { %2279 = dma.done.wait (%p66_p6), [#allocation6], 1024  }
  0xa1   : > { %2281 = vsyncadd (%p66_p6), [#allocation6], 4294966272 }
  0xa2   : > { %2283 = dma.done.wait (%p66_p6), [#allocation9], 1280  }
  0xa3   : > { %2285 = vsyncadd (%p66_p6), [#allocation9], 4294966016  ;;  %v1841_v0 = vld [vmem:[#allocation7 + $0x38] sm:$0xff]  ;;  %v1840_v1 = vld [vmem:[#allocation7 + $0x30] sm:$0xff]  ;;  %s3535_s11 = sld [smem:[#allocation19_spill]]  ;;  %v789_v38 = vlaneseq  ;;  %vm975_vm9 = vcmask 1046528  }
  0xa4   : > { %648 = vmatpush.bf16.msra.mxu0 %v1841_v0  ;;  %1851 = vmatpush.bf16.msra.mxu2 %v1841_v0  ;;  %v1839_v2 = vld [vmem:[#allocation7 + $0x28] sm:$0xff]  ;;  %v1838_v3 = vld [vmem:[#allocation7 + $0x20] sm:$0xff]  ;;  %v1837_v4 = vld [vmem:[#allocation7 + $0x18] sm:$0xff]  ;;  %s3536_s5 = sld [smem:[#allocation40_spill]]  ;;  %vm1037_vm10 = vcmask 1045504   ;;  %s1570_s17 = scalar_lea.sflag [#allocation4], %s2647_s14 }
  0xa5   : > { %1852 = vmatpush.bf16.msra.mxu3 %v1841_v0  ;;  %v1836_v5 = vld [vmem:[#allocation7 + $0x10] sm:$0xff]  ;;  %v1835_v6 = vld [vmem:[#allocation7 + $0x8] sm:$0xff]  ;;  %v1834_v7 = vld [vmem:[#allocation7] sm:$0xff]  ;;  %s3537_s23 = sld [smem:[#allocation41_spill]]  ;;  %v2706_v42 = vshrl.u32 %v789_v38, 7 }
  0xa6   : > { %v557_v8 = vld [vmem:[%s2651_s10] sm:$0xff]  ;;  %v558_v9 = vld [vmem:[%s2651_s10 + $0x8] sm:$0xff]  ;;  %v563_v10 = vld [vmem:[%s2651_s10 + $0x30] sm:$0xff]  ;;  %s3573_s13 = sld [smem:[#allocation43_spill]] }
  0xa7   : > { %v564_v11 = vld [vmem:[%s2651_s10 + $0x38] sm:$0xff]  ;;  %v575_v12 = vpack.c.bf16 %v558_v9, %v557_v8  ;;  %v571_v14 = vld [vmem:[%s2659_s20 + $0x10] sm:$0xff]  ;;  %v565_v19 = vld [vmem:[%s2651_s10 + $0x40] sm:$0xff]  ;;  %vm811_vm3 = vcmp.ge.s32.totalorder %v2706_v42, 1  ;;  %v2735_v62 = vadd.s32 16, %v2706_v42  ;;  %s3574_s6 = sld [smem:[#allocation44_spill]] }
  0xa8   : > { %649 = vmatpush.bf16.msra.mxu0 %v1840_v1  ;;  %1853 = vmatpush.bf16.msra.mxu2 %v1840_v1  ;;  %v578_v13 = vpack.c.bf16 %v564_v11, %v563_v10  ;;  %v572_v15 = vld [vmem:[%s2659_s20 + $0x18] sm:$0xff]  ;;  %v559_v17 = vld [vmem:[%s2651_s10 + $0x10] sm:$0xff]  ;;  %v566_v20 = vld [vmem:[%s2651_s10 + $0x48] sm:$0xff]  ;;  %s3599_s16 = sld [smem:[#allocation45_spill]] }
  0xa9   : > { %1854 = vmatpush.bf16.msra.mxu3 %v1840_v1  ;;  %v582_v16 = vpack.c.bf16 %v572_v15, %v571_v14  ;;  %v560_v18 = vld [vmem:[%s2651_s10 + $0x18] sm:$0xff]  ;;  %v579_v22 = vpack.c.bf16 %v566_v20, %v565_v19  ;;  %v573_v23 = vld [vmem:[%s2659_s20 + $0x20] sm:$0xff]  ;;  %v574_v24 = vld [vmem:[%s2659_s20 + $0x28] sm:$0xff]  ;;  %s1792_s28 = sshll.u32 %s3535_s11, 2  ;;  %vm852_vm11 = vcmp.le.s32.totalorder %v2735_v62, 16  ;;  %s3600_s18 = sld [smem:[#allocation46_spill]] }
  0xaa   : > { %v576_v21 = vpack.c.bf16 %v560_v18, %v559_v17  ;;  %v583_v25 = vpack.c.bf16 %v574_v24, %v573_v23  ;;  %v561_v26 = vld [vmem:[%s2651_s10 + $0x20] sm:$0xff]  ;;  %v562_v27 = vld [vmem:[%s2651_s10 + $0x28] sm:$0xff]  ;;  %v567_v28 = vld [vmem:[%s2651_s10 + $0x50] sm:$0xff]  ;;  %v2703_v40 = vstv %s1792_s28 }
  0xab   : > { %v568_v29 = vld [vmem:[%s2651_s10 + $0x58] sm:$0xff]  ;;  %v577_v30 = vpack.c.bf16 %v562_v27, %v561_v26  ;;  %v569_v32 = vld [vmem:[%s2659_s20] sm:$0xff]  ;;  %v570_v33 = vld [vmem:[%s2659_s20 + $0x8] sm:$0xff]  ;;  %vm793_vm0 = vcmp.ge.s32.totalorder %v2703_v40, 1  ;;  %vm799_vm1 = vcmp.le.s32.totalorder %v2703_v40, 16  ;;  %v785_v46 = vadd.s32 2, %v2703_v40 }
  0xac   : > { %650 = vmatpush.bf16.msra.mxu0 %v1839_v2  ;;  %1855 = vmatpush.bf16.msra.mxu2 %v1839_v2  ;;  %v580_v31 = vpack.c.bf16 %v568_v29, %v567_v28  ;;  %v581_v34 = vpack.c.bf16 %v570_v33, %v569_v32  ;;  %v2694_v35 = vld [vmem:[%s3536_s5] ss:$0 sm:$0xff]  ;;  %vm2712_vm2 = vmand %vm793_vm0, %vm799_vm1  ;;  %v784_v9 = vadd.s32 1, %v2703_v40  ;;  %v2794_v33 = vadd.s32 3, %v2703_v40  ;;  %s1759_s5 = sshll.u32 %s2647_s14, 6 }
  0xad   : > { %1856 = vmatpush.bf16.msra.mxu3 %v1839_v2  ;;  %v2699_v36 = vld [vmem:[%s3537_s23] ss:$0 sm:$0xff]  ;;  %vm832_vm4 = vmand %vm2712_vm2, %vm811_vm3  ;;  %vm795_vm5 = vcmp.ge.s32.totalorder %v785_v46, 1  ;;  %vm801_vm6 = vcmp.le.s32.totalorder %v785_v46, 16  ;;  %v1849_v2 = vld [vmem:[#allocation10 + $0x38] sm:$0xff]  ;;  %s3391_s7 = scalar_lea.vmem [#allocation11], %s1759_s5 }
  0xae   : > { %v2719_v52 = vld [vmem:[#allocation8] sm:$0xff]  ;;  %vm2729_vm7 = vmand %vm795_vm5, %vm801_vm6  ;;  %1460 = vmatpush.bf16.msra.mxu1 %v1849_v2  ;;  %vm794_vm13 = vcmp.ge.s32.totalorder %v784_v9, 1  ;;  %vm800_vm14 = vcmp.le.s32.totalorder %v784_v9, 16  ;;  %vm796_vm0 = vcmp.ge.s32.totalorder %v2794_v33, 1  ;;  %vm802_vm1 = vcmp.le.s32.totalorder %v2794_v33, 16 }
  0xaf   : > { %v2727_v55 = vperm.slane %v2719_v52, 1  ;;  %v2738_v63 = vperm.slane %v2719_v52, 0  ;;  %vm838_vm8 = vmand %vm2729_vm7, %vm811_vm3  ;;  %v2765_v15 = vperm.slane %v2719_v52, 4  ;;  %v2768_v20 = vperm.slane %v2719_v52, 5 }
  0xb0   : > { %651 = vmatpush.bf16.msra.mxu0 %v1838_v3  ;;  %1857 = vmatpush.bf16.msra.mxu2 %v1838_v3  ;;  %vm2775_vm12 = vmand %vm2712_vm2, %vm852_vm11  ;;  %v2780_v24 = vperm.slane %v2719_v52, 7  ;;  %v2791_v32 = vperm.slane %v2719_v52, 3  ;;  %v2806_v47 = vperm.slane %v2719_v52, 6 }
  0xb1   : > { %1858 = vmatpush.bf16.msra.mxu3 %v1838_v3  ;;  %vm867_vm15 = vmand %vm2729_vm7, %vm852_vm11 }
  0xb2   : > { %vm2910_vm6 = vmand %vm796_vm0, %vm802_vm1 }
  0xb3   : > { %vm3018_vm0 = vmand %vm2910_vm6, %vm852_vm11 }
  0xb4   : > { %652 = vmatpush.bf16.msra.mxu0 %v1837_v4  ;;  %1859 = vmatpush.bf16.msra.mxu2 %v1837_v4 }
  0xb5   : > { %1860 = vmatpush.bf16.msra.mxu3 %v1837_v4 }
  0xb8   : > { %653 = vmatpush.bf16.msra.mxu0 %v1836_v5  ;;  %1861 = vmatpush.bf16.msra.mxu2 %v1836_v5 }
  0xb9   : > { %1862 = vmatpush.bf16.msra.mxu3 %v1836_v5 }
  0xbc   : > { %654 = vmatpush.bf16.msra.mxu0 %v1835_v6  ;;  %1863 = vmatpush.bf16.msra.mxu2 %v1835_v6 }
  0xbd   : > { %1864 = vmatpush.bf16.msra.mxu3 %v1835_v6 }
  0xc0   : > { %655 = vmatpush.bf16.msra.mxu0 %v1834_v7  ;;  %1865 = vmatpush.bf16.msra.mxu2 %v1834_v7 }
  0xc1   : > { %1866 = vmatpush.bf16.msra.mxu3 %v1834_v7  ;;  %v2750_v7 = vperm.slane %v2719_v52, 2 }
  0xc3   : > { %656 = vmatmul.bf16.vlgmr.msra.gmra.mxu0 %v575_v12  ;;  %671 = vmatmul.bf16.vlgmr.msra.gmra.mxu2 %v578_v13 }
  0xc4   : > { %691 = vmatmul.bf16.vlgmr.msra.gmra.mxu3 %v582_v16  ;;  %v1848_v16 = vld [vmem:[#allocation10 + $0x30] sm:$0xff] }
  0xc5   : > { %1461 = vmatpush.bf16.msra.mxu1 %v1848_v16 }
  0xd3   : > { %661 = vmatmul.bf16.gmra.mxu0 %v576_v21  ;;  %676 = vmatmul.bf16.gmra.mxu2 %v579_v22 }
  0xd4   : > { %696 = vmatmul.bf16.gmra.mxu3 %v583_v25 }
  0xe3   : > { %666 = vmatmul.bf16.gmra.mxu0 %v577_v30  ;;  %681 = vmatmul.bf16.gmra.mxu2 %v580_v31 }
  0xf3   : > { %686 = vmatmul.bf16.gmra.mxu2 %v581_v34  ;;  %v1847_v34 = vld [vmem:[#allocation10 + $0x28] sm:$0xff] }
  0xf4   : > { %1462 = vmatpush.bf16.msra.mxu1 %v1847_v34 }
 0x140   : > { %v657_v37 = vpop.f32.mrf.mxu0 }
 0x141   : > { %v706_v39 = vmul.f32 %v2694_v35, %v657_v37 }
 0x143   : > { %v728_v41 = vadd.f32 %v2699_v36, %v706_v39 }
 0x145   : > { %v746_v43 = vmax.f32 %v728_v41, 0.0 }
 0x146   : > { %v672_v44 = vpop.f32.mrf.mxu2 }
 0x147   : > { %v712_v45 = vmul.f32 %v2694_v35, %v672_v44  ;;  %v764_v51 = vmin.f32 %v746_v43, 6.0  ;;  %v692_v46 = vpop.f32.mrf.mxu3 }
 0x148   : > { %v659_v48 = vpop.f32.mrf.mxu0  ;;  %v720_v9 = vmul.f32 %v2694_v35, %v692_v46 }
 0x149   : > { %v734_v49 = vadd.f32 %v2699_v36, %v712_v45  ;;  %v707_v50 = vmul.f32 %v2694_v35, %v659_v48  ;;  %v913_v57 = vsel %vm832_vm4, %v764_v51, 0.0 }
 0x14a   : > { %v951_v3 = vmul.f32 %v2727_v55, %v913_v57  ;;  %v1013_v21 = vmul.f32 %v2750_v7, %v913_v57  ;;  %v934_v29 = vmul.f32 %v2738_v63, %v913_v57 }
 0x14b   : > { %v729_v53 = vadd.f32 %v2699_v36, %v707_v50  ;;  %v752_v54 = vmax.f32 %v734_v49, 0.0 }
 0x14c   : > { %v976_v17 = vrot.slane %v951_v3, 1  ;;  %v1038_v43 = vrot.slane %v1013_v21, 2  ;;  %v787_v21 = vadd.s32 4, %v2703_v40 }
 0x14d   : > { %v747_v56 = vmax.f32 %v729_v53, 0.0  ;;  %v770_v0 = vmin.f32 %v752_v54, 6.0 }
 0x14e   : > { %v674_v59 = vpop.f32.mrf.mxu2  ;;  %vm797_vm5 = vcmp.ge.s32.totalorder %v787_v21, 1 }
 0x14f   : > { %v765_v60 = vmin.f32 %v747_v56, 6.0  ;;  %v713_v61 = vmul.f32 %v2694_v35, %v674_v59  ;;  %v2758_v12 = vsel %vm838_vm8, %v770_v0, 0.0 }
 0x150   : > { %v662_v1 = vpop.f32.mrf.mxu0  ;;  %v2784_v25 = vmul.f32 %v2727_v55, %v2758_v12  ;;  %v2811_v49 = vmul.f32 %v2750_v7, %v2758_v12  ;;  %v2887_v34 = vmul.f32 %v2780_v24, %v2758_v12 }
 0x151   : > { %v914_v4 = vsel %vm2712_vm2, %v765_v60, 0.0  ;;  %v735_v5 = vadd.f32 %v2699_v36, %v713_v61  ;;  %v708_v6 = vmul.f32 %v2694_v35, %v662_v1  ;;  %vm2833_vm2 = vmand %vm794_vm13, %vm800_vm14 }
 0x152   : > { %v2753_v8 = vmul.f32 %v2727_v55, %v914_v4  ;;  %v2762_v14 = vmul.f32 %v2750_v7, %v914_v4  ;;  %3544 = vst [vmem:[#allocation29_spill] sm:$0xff] %v2784_v25  ;;  %v935_v53 = vmul.f32 %v2738_v63, %v914_v4  ;;  %vm835_vm4 = vmand %vm2833_vm2, %vm811_vm3 }
 0x153   : > { %v753_v10 = vmax.f32 %v735_v5, 0.0  ;;  %v730_v11 = vadd.f32 %v2699_v36, %v708_v6  ;;  %3545 = vst [vmem:[#allocation30_spill] sm:$0xff] %v2811_v49  ;;  %vm841_vm13 = vmand %vm2910_vm6, %vm811_vm3 }
 0x154   : > { %v977_v13 = vrot.slane %v2753_v8, 1  ;;  %v1039_v30 = vrot.slane %v2762_v14, 2  ;;  %vm864_vm14 = vmand %vm2833_vm2, %vm852_vm11 }
 0x155   : > { %v771_v18 = vmin.f32 %v753_v10, 6.0  ;;  %v748_v19 = vmax.f32 %v730_v11, 0.0 }
 0x156   : > { %v677_v23 = vpop.f32.mrf.mxu2  ;;  %v978_v26 = vsel %vm975_vm9, %v976_v17, %v977_v13  ;;  %v1040_v57 = vsel %vm1037_vm10, %v1038_v43, %v1039_v30  ;;  %v694_v43 = vpop.f32.mrf.mxu3 }
 0x157   : > { %v766_v27 = vmin.f32 %v748_v19, 6.0  ;;  %v714_v28 = vmul.f32 %v2694_v35, %v677_v23  ;;  %v2798_v37 = vsel %vm2729_vm7, %v771_v18, 0.0  ;;  %v1004_v44 = vadd.f32 %v978_v26, %v934_v29 }
 0x158   : > { %v664_v31 = vpop.f32.mrf.mxu0  ;;  %v2822_v52 = vmul.f32 %v2727_v55, %v2798_v37  ;;  %v2829_v60 = vmul.f32 %v2738_v63, %v2798_v37  ;;  %v2842_v2 = vmul.f32 %v2750_v7, %v2798_v37  ;;  %v2846_v4 = vmul.f32 %v2791_v32, %v2798_v37 }
 0x159   : > { %v915_v38 = vsel %vm2775_vm12, %v766_v27, 0.0  ;;  %v736_v39 = vadd.f32 %v2699_v36, %v714_v28  ;;  %v709_v41 = vmul.f32 %v2694_v35, %v664_v31  ;;  %v2837_v0 = vadd.f32 %v1040_v57, %v1004_v44 }
 0x15a   : > { %v953_v45 = vmul.f32 %v2727_v55, %v915_v38  ;;  %v1015_v56 = vmul.f32 %v2750_v7, %v915_v38  ;;  %3546 = vst [vmem:[#allocation31_spill] sm:$0xff] %v2822_v52  ;;  %v3489_v22 = vrot.slane %v2842_v2, 2  ;;  %v2877_v26 = vmul.f32 %v2806_v47, %v2758_v12 }
 0x15b   : > { %v754_v50 = vmax.f32 %v736_v39, 0.0  ;;  %v731_v51 = vadd.f32 %v2699_v36, %v709_v41  ;;  %3549 = vst [vmem:[#allocation32_spill] sm:$0xff] %v2842_v2  ;;  %v2881_v27 = vmul.f32 %v2806_v47, %v2798_v37  ;;  %v742_v31 = vadd.f32 %v2699_v36, %v720_v9 }
 0x15c   : > { %v979_v54 = vrot.slane %v953_v45, 1  ;;  %v1041_v10 = vrot.slane %v1015_v56, 2  ;;  %v2892_v44 = vmul.f32 %v2780_v24, %v2798_v37  ;;  %vm803_vm7 = vcmp.le.s32.totalorder %v787_v21, 16 }
 0x15d   : > { %v772_v59 = vmin.f32 %v754_v50, 6.0  ;;  %v749_v61 = vmax.f32 %v731_v51, 0.0  ;;  %v1846_v51 = vld [vmem:[#allocation10 + $0x20] sm:$0xff]  ;;  %vm2928_vm8 = vmand %vm797_vm5, %vm803_vm7 }
 0x15e   : > { %v980_v1 = vsel %vm975_vm9, %v977_v13, %v979_v54  ;;  %v679_v3 = vpop.f32.mrf.mxu2  ;;  %v3490_v13 = vrot.slane %v2822_v52, 1  ;;  %v1042_v38 = vsel %vm1037_vm10, %v1039_v30, %v1041_v10  ;;  %1463 = vmatpush.bf16.msra.mxu1 %v1846_v51  ;;  %vm873_vm12 = vmand %vm2928_vm8, %vm852_vm11 }
 0x15f   : > { %v2848_v5 = vsel %vm867_vm15, %v772_v59, 0.0  ;;  %v767_v6 = vmin.f32 %v749_v61, 6.0  ;;  %v715_v8 = vmul.f32 %v2694_v35, %v679_v3  ;;  %v1005_v17 = vadd.f32 %v980_v1, %v935_v53  ;;  %vm844_vm5 = vmand %vm2928_vm8, %vm811_vm3 }
 0x160   : > { %v959_v11 = vmul.f32 %v2727_v55, %v2848_v5  ;;  %v1021_v14 = vmul.f32 %v2750_v7, %v2848_v5  ;;  %v667_v16 = vpop.f32.mrf.mxu0  ;;  %v2863_v18 = vmul.f32 %v2765_v15, %v2848_v5  ;;  %v2867_v19 = vmul.f32 %v2768_v20, %v2848_v5 }
 0x161   : > { %v2873_v23 = vmul.f32 %v2780_v24, %v2848_v5  ;;  %v916_v28 = vsel %vm835_vm4, %v767_v6, 0.0  ;;  %v737_v29 = vadd.f32 %v2699_v36, %v715_v8  ;;  %v2894_v45 = vadd.f32 %v1042_v38, %v1005_v17 }
 0x162   : > { %v989_v39 = vrot.slane %v959_v11, 1  ;;  %v1051_v41 = vrot.slane %v1021_v14, 2  ;;  %v2900_v54 = vmul.f32 %v2738_v63, %v916_v28  ;;  %v2903_v30 = vmul.f32 %v2727_v55, %v916_v28 }
 0x163   : > { %v710_v56 = vmul.f32 %v2694_v35, %v667_v16  ;;  %v755_v59 = vmax.f32 %v737_v29, 0.0  ;;  %v760_v3 = vmax.f32 %v742_v31, 0.0  ;;  %v2924_v33 = vmul.f32 %v2750_v7, %v916_v28  ;;  %v1845_v31 = vld [vmem:[#allocation10 + $0x18] sm:$0xff] }
 0x164   : > { %v990_v6 = vsel %vm975_vm9, %v3490_v13, %v989_v39  ;;  %v2921_v8 = vsel %vm1037_vm10, %v3489_v22, %v1051_v41  ;;  %v721_v29 = vmul.f32 %v2694_v35, %v694_v43  ;;  %v1075_v38 = vmul.f32 %v2791_v32, %v916_v28  ;;  %1464 = vmatpush.bf16.msra.mxu1 %v1845_v31  ;;  %v697_v22 = vpop.f32.mrf.mxu3 }
 0x165   : > { %3552 = vst [vmem:[#allocation33_spill] sm:$0xff] %v2921_v8  ;;  %v732_v9 = vadd.f32 %v2699_v36, %v710_v56  ;;  %v778_v17 = vmin.f32 %v760_v3, 6.0  ;;  %v2941_v21 = vmul.f32 %v2765_v15, %v916_v28  ;;  %v2944_v39 = vmul.f32 %v2768_v20, %v916_v28 }
 0x166   : > { %v682_v57 = vpop.f32.mrf.mxu2  ;;  %v773_v51 = vmin.f32 %v755_v59, 6.0  ;;  %v2949_v3 = vadd.f32 %v990_v6, %v2829_v60  ;;  %v2962_v60 = vadd.f32 %v1075_v38, %v2837_v0  ;;  %v2977_v0 = vld [vmem:[#allocation8 + $0x8] ss:$0 sm:$0xff]  ;;  %v1843_v38 = vld [vmem:[#allocation10 + $0x8] sm:$0xff] }
 0x167   : > { %v716_v1 = vmul.f32 %v2694_v35, %v682_v57  ;;  %v750_v41 = vmax.f32 %v732_v9, 0.0  ;;  %v927_v57 = vsel %vm873_vm12, %v778_v17, 0.0  ;;  %v1844_v9 = vld [vmem:[#allocation10 + $0x10] sm:$0xff] }
 0x168   : > { %v669_v10 = vpop.f32.mrf.mxu0  ;;  %3555 = vst [vmem:[#allocation34_spill] sm:$0xff] %v2949_v3  ;;  %v2958_v17 = vmul.f32 %v2765_v15, %v927_v57  ;;  %v2971_v48 = vsel %vm841_vm13, %v773_v51, 0.0  ;;  %1465 = vmatpush.bf16.msra.mxu1 %v1844_v9  ;;  %v2987_v50 = vmul.f32 %v2780_v24, %v927_v57  ;;  %v2992_v53 = vmul.f32 %v2977_v0, %v927_v57 }
 0x169   : > { %v738_v14 = vadd.f32 %v2699_v36, %v716_v1  ;;  %v711_v16 = vmul.f32 %v2694_v35, %v669_v10  ;;  %v788_v1 = vadd.s32 5, %v2703_v40  ;;  %v768_v28 = vmin.f32 %v750_v41, 6.0 }
 0x16a   : > { %3556 = vst [vmem:[#allocation35_spill] sm:$0xff] %v2958_v17  ;;  %v743_v40 = vadd.f32 %v2699_v36, %v721_v29  ;;  %v2968_v41 = vmul.f32 %v2768_v20, %v927_v57  ;;  %v2980_v29 = vmul.f32 %v2694_v35, %v697_v22  ;;  %v1842_v57 = vld [vmem:[#allocation10] sm:$0xff] }
 0x16b   : > { %v733_v56 = vadd.f32 %v2699_v36, %v711_v16  ;;  %v756_v10 = vmax.f32 %v738_v14, 0.0  ;;  %v917_v31 = vsel %vm2833_vm2, %v768_v28, 0.0  ;;  %vm798_vm15 = vcmp.ge.s32.totalorder %v788_v1, 1 }
 0x16c   : > { %3557 = vst [vmem:[#allocation36_spill] sm:$0xff] %v2968_v41  ;;  %v2984_v28 = vmul.f32 %v2727_v55, %v2971_v48  ;;  %v955_v58 = vmul.f32 %v2727_v55, %v917_v31  ;;  %v761_v22 = vmax.f32 %v743_v40, 0.0  ;;  %v937_v9 = vmul.f32 %v2738_v63, %v917_v31  ;;  %1466 = vmatpush.bf16.msra.mxu1 %v1843_v38 }
 0x16d   : > { %v751_v16 = vmax.f32 %v733_v56, 0.0  ;;  %v774_v13 = vmin.f32 %v756_v10, 6.0  ;;  %v1017_v10 = vmul.f32 %v2750_v7, %v917_v31  ;;  %v3000_v43 = vmul.f32 %v2765_v15, %v917_v31 }
 0x16e   : > { %v684_v14 = vpop.f32.mrf.mxu2  ;;  %v3008_v41 = vmul.f32 %v2768_v20, %v917_v31  ;;  %vm804_vm1 = vcmp.le.s32.totalorder %v788_v1, 16  ;;  %v3562_v1 = vrot.slane %v2903_v30, 1  ;;  %v3565_v30 = vrot.slane %v2924_v33, 2 }
 0x16f   : > { %v769_v51 = vmin.f32 %v751_v16, 6.0  ;;  %v717_v59 = vmul.f32 %v2694_v35, %v684_v14  ;;  %v1076_v16 = vmul.f32 %v2791_v32, %v917_v31  ;;  %v982_v14 = vrot.slane %v955_v58, 1  ;;  %vm3025_vm2 = vmand %vm798_vm15, %vm804_vm1 }
 0x170   : > { %v3012_v8 = vsel %vm2910_vm6, %v774_v13, 0.0  ;;  %v1044_v31 = vrot.slane %v1017_v10, 2  ;;  %1467 = vmatpush.bf16.msra.mxu1 %v1842_v57  ;;  %vm847_vm4 = vmand %vm3025_vm2, %vm811_vm3  ;;  %v3496_v10 = vrot.slane %v3008_v41, 2 }
 0x171   : > { %v918_v56 = vsel %vm864_vm14, %v769_v51, 0.0  ;;  %v739_v6 = vadd.f32 %v2699_v36, %v717_v59  ;;  %v779_v59 = vmin.f32 %v761_v22, 6.0  ;;  %v961_v22 = vmul.f32 %v2727_v55, %v3012_v8  ;;  %vm876_vm3 = vmand %vm3025_vm2, %vm852_vm11 }
 0x172   : > { %v956_v46 = vmul.f32 %v2727_v55, %v918_v56  ;;  %v1018_v40 = vmul.f32 %v2750_v7, %v918_v56  ;;  %v1094_v17 = vmul.f32 %v2765_v15, %v918_v56  ;;  %v1155_v51 = vmul.f32 %v2768_v20, %v918_v56 }
 0x173   : > { %v757_v38 = vmax.f32 %v739_v6, 0.0  ;;  %v992_v33 = vrot.slane %v961_v22, 1  ;;  %v1022_v22 = vmul.f32 %v2750_v7, %v2971_v48 }
 0x174   : > { %v984_v3 = vrot.slane %v956_v46, 1  ;;  %v1119_v2 = vrot.slane %v1094_v17, 1  ;;  %v1046_v61 = vrot.slane %v1018_v40, 2  ;;  %v1180_v6 = vrot.slane %v1155_v51, 2  ;;  %v3577_v46 = vld [vmem:[#allocation31_spill] sm:$0xff] }
 0x175   : > { %v775_v25 = vmin.f32 %v757_v38, 6.0  ;;  %v3563_v40 = vrot.slane %v3000_v43, 1  ;;  %v1053_v42 = vrot.slane %v1022_v22, 2 }
 0x176   : > { %v687_v56 = vpop.f32.mrf.mxu2  ;;  %v985_v13 = vsel %vm975_vm9, %v982_v14, %v984_v3  ;;  %v983_v3 = vsel %vm975_vm9, %v3562_v1, %v982_v14  ;;  %v3054_v14 = vsel %vm1037_vm10, %v3565_v30, %v1044_v31 }
 0x177   : > { %v718_v17 = vmul.f32 %v2694_v35, %v687_v56  ;;  %v1007_v58 = vadd.f32 %v985_v13, %v937_v9  ;;  %v1120_v51 = vsel %vm975_vm9, %v3563_v40, %v1119_v2  ;;  %v3046_v38 = vsel %vm3018_vm0, %v775_v25, 0.0 }
 0x178   : > { %v3048_v56 = vsel %vm847_vm4, %v779_v59, 0.0  ;;  %v1084_v9 = vadd.f32 %v1076_v16, %v2894_v45  ;;  %v962_v2 = vmul.f32 %v2727_v55, %v3046_v38  ;;  %v3061_v49 = vadd.f32 %v983_v3, %v2900_v54 }
 0x179   : > { %3564 = vst [vmem:[#allocation37_spill] sm:$0xff] %v3048_v56  ;;  %v740_v52 = vadd.f32 %v2699_v36, %v718_v17  ;;  %v1047_v25 = vsel %vm1037_vm10, %v1044_v31, %v1046_v61  ;;  %v3067_v59 = vsel %vm1037_vm10, %v3496_v10, %v1180_v6  ;;  %v3071_v45 = vmul.f32 %v2806_v47, %v3048_v56 }
 0x17a   : > { %v1069_v17 = vadd.f32 %v1047_v25, %v1007_v58  ;;  %v1145_v1 = vadd.f32 %v1120_v51, %v1084_v9  ;;  %v940_v55 = vmul.f32 %v2738_v63, %v2971_v48  ;;  %v1024_v54 = vmul.f32 %v2750_v7, %v3046_v38  ;;  %v699_v51 = vpop.f32.mrf.mxu3 }
 0x17b   : > { %3566 = vst [vmem:[#allocation38_spill] sm:$0xff] %v3071_v45  ;;  %v3079_v16 = vmul.f32 %v2780_v24, %v3048_v56  ;;  %v758_v31 = vmax.f32 %v740_v52, 0.0  ;;  %v991_v61 = vrot.slane %v2984_v28, 1  ;;  %v994_v58 = vrot.slane %v962_v2, 1 }
 0x17c   : > { %v1023_v3 = vmul.f32 %v2750_v7, %v3012_v8  ;;  %v744_v40 = vadd.f32 %v2699_v36, %v2980_v29  ;;  %v3090_v30 = vmul.f32 %v2765_v15, %v3046_v38  ;;  %v3100_v7 = vmul.f32 %v2768_v20, %v3046_v38 }
 0x17d   : > { %3567 = vst [vmem:[#allocation39_spill] sm:$0xff] %v3079_v16  ;;  %v776_v9 = vmin.f32 %v758_v31, 6.0  ;;  %v993_v52 = vsel %vm975_vm9, %v991_v61, %v992_v33  ;;  %v3104_v29 = vmul.f32 %v2780_v24, %v3046_v38  ;;  %v941_v25 = vmul.f32 %v2738_v63, %v3012_v8 }
 0x17e   : > { %v689_v6 = vpop.f32.mrf.mxu2  ;;  %v762_v2 = vmax.f32 %v744_v40, 0.0  ;;  %v1054_v31 = vrot.slane %v1023_v3, 2  ;;  %v723_v61 = vmul.f32 %v2694_v35, %v699_v51  ;;  %v1056_v57 = vrot.slane %v1024_v54, 2 }
 0x17f   : > { %v719_v28 = vmul.f32 %v2694_v35, %v689_v6  ;;  %v995_v6 = vsel %vm975_vm9, %v992_v33, %v994_v58  ;;  %v3111_v10 = vsel %vm844_vm5, %v776_v9, 0.0  ;;  %v1010_v45 = vadd.f32 %v993_v52, %v940_v55 }
 0x180   : > { %v3114_v56 = vadd.f32 %v2846_v4, %v1069_v17  ;;  %v1129_v40 = vrot.slane %v3090_v30, 1  ;;  %v3119_v16 = vmul.f32 %v2765_v15, %v3111_v10  ;;  %v1190_v3 = vrot.slane %v3100_v7, 2 }
 0x181   : > { %v741_v13 = vadd.f32 %v2699_v36, %v719_v28  ;;  %v3124_v35 = vmul.f32 %v2768_v20, %v3111_v10  ;;  %v780_v33 = vmin.f32 %v762_v2, 6.0  ;;  %v745_v54 = vadd.f32 %v2699_v36, %v723_v61 }
 0x182   : > { %v1055_v55 = vsel %vm1037_vm10, %v1053_v42, %v1054_v31  ;;  %v1081_v4 = vmul.f32 %v2791_v32, %v3111_v10  ;;  %v1011_v58 = vadd.f32 %v995_v6, %v941_v25  ;;  %v1263_v51 = vrot.slane %v3104_v29, 1  ;;  %v3581_v29 = vld [vmem:[#allocation30_spill] sm:$0xff] }
 0x183   : > { %v759_v22 = vmax.f32 %v741_v13, 0.0  ;;  %v1072_v9 = vadd.f32 %v1055_v55, %v1010_v45  ;;  %v3133_v13 = vmul.f32 %v2780_v24, %v3111_v10  ;;  %v1057_v52 = vsel %vm1037_vm10, %v1054_v31, %v1056_v57 }
 0x184   : > { %v763_v2 = vmax.f32 %v745_v54, 0.0  ;;  %v3568_v42 = vrot.slane %v3000_v43, 1  ;;  %v3569_v25 = vrot.slane %v2941_v21, 1  ;;  %v3149_v6 = vsel %vm3025_vm2, %v780_v33, 0.0 }
 0x185   : > { %v777_v17 = vmin.f32 %v759_v22, 6.0  ;;  %v3157_v31 = vadd.f32 %v1081_v4, %v1072_v9  ;;  %v1073_v43 = vadd.f32 %v1057_v52, %v1011_v58  ;;  %v3570_v22 = vrot.slane %v3008_v41, 2 }
 0x186   : > { %v1118_v61 = vsel %vm975_vm9, %v3569_v25, %v3568_v42  ;;  %v3571_v54 = vrot.slane %v2944_v39, 2  ;;  %v1206_v4 = vadd.f32 %v3067_v59, %v1145_v1  ;;  %v1255_v58 = vrot.slane %v2887_v34, 1 }
 0x187   : > { %v3139_v36 = vsel %vm2928_vm8, %v777_v17, 0.0  ;;  %v1144_v21 = vadd.f32 %v1118_v61, %v2962_v60  ;;  %v1265_v60 = vrot.slane %v3133_v13, 1  ;;  %v3178_v41 = vmul.f32 %v2780_v24, %v3149_v6 }
 0x188   : > { %v1082_v57 = vmul.f32 %v2791_v32, %v3139_v36  ;;  %v3155_v11 = vmul.f32 %v2765_v15, %v3139_v36  ;;  %v1179_v55 = vsel %vm1037_vm10, %v3571_v54, %v3570_v22  ;;  %v3167_v33 = vmul.f32 %v2768_v20, %v3139_v36 }
 0x189   : > { %v3171_v17 = vmul.f32 %v2780_v24, %v3139_v36  ;;  %v3180_v39 = vmin.f32 %v763_v2, 6.0  ;;  %v1205_v9 = vadd.f32 %v1179_v55, %v1144_v21  ;;  %v1223_v25 = vadd.f32 %v2881_v27, %v1206_v4 }
 0x18a   : > { %v3182_v52 = vadd.f32 %v1082_v57, %v1073_v43  ;;  %v1132_v42 = vrot.slane %v3155_v11, 1  ;;  %v1256_v61 = vrot.slane %v2892_v44, 1  ;;  %v1292_v34 = vmul.f32 %v2977_v0, %v2758_v12 }
 0x18b   : > { %v1222_v59 = vadd.f32 %v2877_v26, %v1205_v9  ;;  %v1293_v1 = vmul.f32 %v2977_v0, %v2798_v37  ;;  %v1294_v2 = vmul.f32 %v2977_v0, %v2848_v5  ;;  %v1266_v43 = vrot.slane %v3171_v17, 1  ;;  %v3203_v9 = vld [vmem:[%s3573_s13] ss:$0 sm:$0xff]  ;;  %s3602_s13 = sld [smem:[#allocation47_spill]] }
 0x18c   : > { %v1257_v21 = vsel %vm975_vm9, %v1255_v58, %v1256_v61  ;;  %v3572_v27 = vrot.slane %v2873_v23, 1  ;;  %v1316_v54 = vrot.slane %v1292_v34, 2  ;;  %v1068_v5 = vadd.f32 %v3054_v14, %v3061_v49  ;;  %v3222_v49 = vld [vmem:[%s3574_s6] ss:$0 sm:$0xff]  ;;  %s1585_s6 = sshll.u32 %s3391_s7, 4  ;;  %s1586_s6 = int_to_ptr.vmem [resolvable:$true] %s1585_s6 }
 0x18d   : > { %v1283_v26 = vadd.f32 %v1257_v21, %v1222_v59  ;;  %v1317_v55 = vrot.slane %v1293_v1, 2  ;;  %v1319_v4 = vrot.slane %v1294_v2, 2  ;;  %v1077_v58 = vmul.f32 %v2791_v32, %v2758_v12 }
 0x18e   : > { %v1259_v44 = vsel %vm975_vm9, %v1256_v61, %v3572_v27  ;;  %v1095_v23 = vmul.f32 %v2765_v15, %v2758_v12  ;;  %v1156_v59 = vmul.f32 %v2768_v20, %v2758_v12  ;;  %v1157_v34 = vmul.f32 %v2768_v20, %v2798_v37 }
 0x18f   : > { %v1284_v22 = vadd.f32 %v1259_v44, %v1223_v25  ;;  %v1318_v61 = vsel %vm1037_vm10, %v1316_v54, %v1317_v55  ;;  %v1096_v25 = vmul.f32 %v2765_v15, %v2798_v37  ;;  %v1320_v1 = vsel %vm1037_vm10, %v1317_v55, %v1319_v4 }
 0x190   : > { %v1344_v14 = vadd.f32 %v1318_v61, %v1283_v26  ;;  %v1085_v2 = vadd.f32 %v1077_v58, %v1068_v5  ;;  %v1121_v21 = vrot.slane %v1095_v23, 1  ;;  %v1182_v54 = vrot.slane %v1156_v59, 2 }
 0x191   : > { %v1345_v27 = vadd.f32 %v1320_v1, %v1284_v22  ;;  %v1122_v44 = vrot.slane %v1096_v25, 1  ;;  %v1183_v45 = vrot.slane %v1157_v34, 2  ;;  %v1216_v28 = vmul.f32 %v2806_v47, %v2971_v48 }
 0x192   : > { %v1356_v57 = vmul.f32 %v3203_v9, %v1344_v14  ;;  %v1217_v37 = vmul.f32 %v2806_v47, %v3012_v8  ;;  %v1234_v26 = vmul.f32 %v2780_v24, %v2971_v48  ;;  %v3575_v22 = vrot.slane %v2863_v18, 1 }
 0x193   : > { %v1357_v55 = vmul.f32 %v3203_v9, %v1345_v27  ;;  %v1123_v4 = vsel %vm975_vm9, %v1121_v21, %v1122_v44  ;;  %v1184_v58 = vsel %vm1037_vm10, %v1182_v54, %v1183_v45  ;;  %v3576_v59 = vrot.slane %v2867_v19, 2 }
 0x194   : > { %v1125_v5 = vsel %vm975_vm9, %v1122_v44, %v3575_v22  ;;  %v1368_v23 = vadd.f32 %v3222_v49, %v1356_v57  ;;  %v1146_v61 = vadd.f32 %v1123_v4, %v1085_v2  ;;  %v1235_v14 = vmul.f32 %v2780_v24, %v3012_v8 }
 0x195   : > { %v1147_v25 = vadd.f32 %v1125_v5, %v3114_v56  ;;  %v1186_v34 = vsel %vm1037_vm10, %v1183_v45, %v3576_v59  ;;  %v1369_v1 = vadd.f32 %v3222_v49, %v1357_v55  ;;  %v1260_v21 = vrot.slane %v1234_v26, 1 }
 0x196   : > { %v1295_v18 = vmul.f32 %v2977_v0, %v2971_v48  ;;  %v1376_v27 = vmax.f32 %v1368_v23, 0.0  ;;  %v1207_v44 = vadd.f32 %v1184_v58, %v1146_v61  ;;  %v1296_v57 = vmul.f32 %v2977_v0, %v3012_v8 }
 0x197   : > { %v1208_v54 = vadd.f32 %v1186_v34, %v1147_v25  ;;  %v1377_v56 = vmax.f32 %v1369_v1, 0.0  ;;  %v1261_v2 = vrot.slane %v1235_v14, 1  ;;  %v1297_v19 = vmul.f32 %v2977_v0, %v3046_v38  ;;  %v3579_v1 = vld [vmem:[#allocation29_spill] sm:$0xff] }
 0x198   : > { %v1321_v45 = vrot.slane %v1295_v18, 2  ;;  %v1384_v55 = vmin.f32 %v1376_v27, 6.0  ;;  %v1224_v4 = vadd.f32 %v1216_v28, %v1207_v44  ;;  %v1322_v5 = vrot.slane %v1296_v57, 2  ;;  %v3582_v57 = vld [vmem:[#allocation32_spill] sm:$0xff] }
 0x199   : > { %v1225_v22 = vadd.f32 %v1217_v37, %v1208_v54  ;;  %v1385_v26 = vmin.f32 %v1377_v56, 6.0  ;;  %v1262_v58 = vsel %vm975_vm9, %v1260_v21, %v1261_v2  ;;  %v1264_v23 = vsel %vm975_vm9, %v1261_v2, %v1263_v51 }
 0x19a   : > { %v1324_v61 = vrot.slane %v1297_v19, 2  ;;  %v1285_v25 = vadd.f32 %v1262_v58, %v1224_v4  ;;  %v1323_v59 = vsel %vm1037_vm10, %v1321_v45, %v1322_v5  ;;  %v938_v28 = vmul.f32 %v2738_v63, %v2758_v12  ;;  %v3585_v4 = vld [vmem:[#allocation33_spill] sm:$0xff] }
 0x19b   : > { %v1286_v38 = vadd.f32 %v1264_v23, %v1225_v22  ;;  %v1392_v37 = vpack.c.bf16 %v1385_v26, %v1384_v55  ;;  %v3578_v34 = vrot.slane %v3577_v46, 1  ;;  %v3580_v14 = vrot.slane %v3579_v1, 1  ;;  %v3584_v55 = vld [vmem:[#allocation34_spill] sm:$0xff] }
 0x19c   : > { %v1325_v62 = vsel %vm1037_vm10, %v1322_v5, %v1324_v61  ;;  %v1048_v18 = vrot.slane %v3581_v29, 2  ;;  %v3270_v51 = vsel %vm876_vm3, %v3180_v39, 0.0  ;;  %v1346_v27 = vadd.f32 %v1323_v59, %v1285_v25 }
 0x19d   : > { %v988_v21 = vsel %vm975_vm9, %v3580_v14, %v3578_v34  ;;  %v1347_v44 = vadd.f32 %v1325_v62, %v1286_v38  ;;  %1468 = vmatmul.bf16.vlgmr.msra.gmra.mxu1 %v1392_v37  ;;  %v3583_v63 = vrot.slane %v3582_v57, 2  ;;  %v1079_v56 = vmul.f32 %v2791_v32, %v2971_v48 }
 0x19e   : > { %v1008_v54 = vadd.f32 %v988_v21, %v938_v28  ;;  %v1080_v2 = vmul.f32 %v2791_v32, %v3012_v8  ;;  %v1098_v19 = vmul.f32 %v2765_v15, %v2971_v48  ;;  %v1358_v39 = vmul.f32 %v3203_v9, %v1346_v27 }
 0x19f   : > { %v1050_v12 = vsel %vm1037_vm10, %v1048_v18, %v3583_v63  ;;  %v1359_v45 = vmul.f32 %v3203_v9, %v1347_v44  ;;  %v1071_v22 = vadd.f32 %v3585_v4, %v3584_v55  ;;  %v1099_v5 = vmul.f32 %v2765_v15, %v3012_v8 }
 0x1a0   : > { %v1070_v26 = vadd.f32 %v1050_v12, %v1008_v54  ;;  %v1126_v58 = vrot.slane %v1098_v19, 1  ;;  %v1159_v23 = vmul.f32 %v2768_v20, %v2971_v48  ;;  %v1160_v32 = vmul.f32 %v2768_v20, %v3012_v8  ;;  %v3588_v12 = vld [vmem:[#allocation35_spill] sm:$0xff] }
 0x1a1   : > { %v1370_v61 = vadd.f32 %v3222_v49, %v1358_v39  ;;  %v1371_v25 = vadd.f32 %v3222_v49, %v1359_v45  ;;  %v1088_v38 = vadd.f32 %v1080_v2, %v1071_v22  ;;  %v1127_v59 = vrot.slane %v1099_v5, 1  ;;  %v3592_v45 = vld [vmem:[#allocation36_spill] sm:$0xff] }
 0x1a2   : > { %v1087_v28 = vadd.f32 %v1079_v56, %v1070_v26  ;;  %v1187_v37 = vrot.slane %v1159_v23, 2  ;;  %v1188_v62 = vrot.slane %v1160_v32, 2  ;;  %v1218_v15 = vmul.f32 %v2806_v47, %v3111_v10  ;;  %v3596_v26 = vld [vmem:[#allocation39_spill] sm:$0xff]  ;;  %v3597_v23 = vld [vmem:[#allocation37_spill] sm:$0xff] }
 0x1a3   : > { %v1378_v46 = vmax.f32 %v1370_v61, 0.0  ;;  %v1379_v34 = vmax.f32 %v1371_v25, 0.0  ;;  %v1128_v1 = vsel %vm975_vm9, %v1126_v58, %v1127_v59  ;;  %v1130_v20 = vsel %vm975_vm9, %v1127_v59, %v1129_v40 }
 0x1a4   : > { %v1148_v48 = vadd.f32 %v1128_v1, %v1087_v28  ;;  %v1149_v8 = vadd.f32 %v1130_v20, %v1088_v38  ;;  %v1191_v14 = vsel %vm1037_vm10, %v1188_v62, %v1190_v3  ;;  %v1219_v21 = vmul.f32 %v2806_v47, %v3139_v36  ;;  %v3598_v20 = vld [vmem:[#allocation38_spill] sm:$0xff] }
 0x1a5   : > { %v1242_v29 = vmul.f32 %v2780_v24, %v3270_v51  ;;  %v1386_v18 = vmin.f32 %v1378_v46, 6.0  ;;  %v1387_v27 = vmin.f32 %v1379_v34, 6.0  ;;  %v1189_v44 = vsel %vm1037_vm10, %v1187_v37, %v1188_v62 }
 0x1a6   : > { %v1209_v54 = vadd.f32 %v1189_v44, %v1148_v48  ;;  %v1210_v30 = vadd.f32 %v1191_v14, %v1149_v8  ;;  %v1298_v40 = vmul.f32 %v2977_v0, %v3111_v10  ;;  %v1299_v7 = vmul.f32 %v2977_v0, %v3139_v36 }
 0x1a7   : > { %v1267_v3 = vsel %vm975_vm9, %v1265_v60, %v1266_v43  ;;  %v3586_v24 = vrot.slane %v2987_v50, 1  ;;  %v3587_v63 = vrot.slane %v3119_v16, 1  ;;  %v3589_v36 = vrot.slane %v3588_v12, 1 }
 0x1a8   : > { %v1226_v56 = vadd.f32 %v1218_v15, %v1209_v54  ;;  %v1227_v60 = vadd.f32 %v1219_v21, %v1210_v30  ;;  %v1326_v2 = vrot.slane %v1298_v40, 2  ;;  %v1327_v50 = vrot.slane %v1299_v7, 2 }
 0x1a9   : > { %v1269_v57 = vsel %vm975_vm9, %v1266_v43, %v3586_v24  ;;  %v1133_v10 = vsel %vm975_vm9, %v3587_v63, %v1132_v42  ;;  %v1135_v13 = vsel %vm975_vm9, %v1132_v42, %v3589_v36  ;;  %v3590_v19 = vrot.slane %v3167_v33, 2 }
 0x1aa   : > { %v1150_v17 = vadd.f32 %v1133_v10, %v3157_v31  ;;  %v1151_v43 = vadd.f32 %v1135_v13, %v3182_v52  ;;  %v3591_v16 = vrot.slane %v3124_v35, 2  ;;  %v3593_v55 = vrot.slane %v3592_v45, 2 }
 0x1ab   : > { %v3594_v11 = vmov %v3590_v19  ;;  %v1287_v4 = vadd.f32 %v1267_v3, %v1226_v56  ;;  %v1288_v22 = vadd.f32 %v1269_v57, %v1227_v60  ;;  %v1328_v5 = vsel %vm1037_vm10, %v1326_v2, %v1327_v50  ;;  %v2018_v2 = vld [vmem:[%s2651_s10 + $0x18] sm:$0xff] }
 0x1ac   : > { %v1194_v39 = vsel %vm1037_vm10, %v3591_v16, %v3590_v19  ;;  %v1196_v42 = vsel %vm1037_vm10, %v3594_v11, %v3593_v55  ;;  %v3595_v31 = vrot.slane %v2992_v53, 2  ;;  %v1270_v58 = vrot.slane %v3596_v26, 1  ;;  %v2020_v19 = vld [vmem:[%s2651_s10 + $0x28] sm:$0xff]  ;;  %v2022_v55 = vld [vmem:[%s2651_s10 + $0x38] sm:$0xff] }
 0x1ad   : > { %v1301_v35 = vmul.f32 %v2977_v0, %v3597_v23  ;;  %v1221_v32 = vmul.f32 %v2806_v47, %v3149_v6  ;;  %v1393_v61 = vpack.c.bf16 %v1387_v27, %v1386_v18  ;;  %v1348_v33 = vadd.f32 %v1328_v5, %v1287_v4  ;;  %v2023_v4 = vld [vmem:[%s2651_s10 + $0x40] sm:$0xff] }
 0x1ae   : > { %v1330_v52 = vsel %vm1037_vm10, %v1327_v50, %v3595_v31  ;;  %v1211_v38 = vadd.f32 %v1194_v39, %v1150_v17  ;;  %v1212_v59 = vadd.f32 %v1196_v42, %v1151_v43  ;;  %v1271_v28 = vrot.slane %v3178_v41, 1  ;;  %v2019_v17 = vld [vmem:[%s2651_s10 + $0x20] sm:$0xff]  ;;  %v2021_v39 = vld [vmem:[%s2651_s10 + $0x30] sm:$0xff] }
 0x1af   : > { %v1349_v25 = vadd.f32 %v1330_v52, %v1288_v22  ;;  %v1302_v53 = vmul.f32 %v2977_v0, %v3149_v6  ;;  %v1273_v37 = vrot.slane %v1242_v29, 1  ;;  %v1303_v62 = vmul.f32 %v2977_v0, %v3270_v51  ;;  %1473 = vmatmul.bf16.gmra.mxu1 %v1393_v61  ;;  %v2016_v31 = vld [vmem:[%s3599_s16] ss:$0 sm:$0xff]  ;;  %v2024_v52 = vld [vmem:[%s2651_s10 + $0x48] sm:$0xff] }
 0x1b0   : > { %v1360_v15 = vmul.f32 %v3203_v9, %v1348_v33  ;;  %v1331_v47 = vrot.slane %v1301_v35, 2  ;;  %v1228_v48 = vadd.f32 %v3598_v20, %v1211_v38  ;;  %v1229_v41 = vadd.f32 %v1221_v32, %v1212_v59  ;;  %v2017_v35 = vld [vmem:[%s3600_s18] ss:$0 sm:$0xff]  ;;  %v2026_v59 = vld [vmem:[%s2651_s10 + $0x58] sm:$0xff]  ;;  %s2218_s18 = scalar_lea.hbm %s3602_s13, 512 }
 0x1b1   : > { %v1361_v46 = vmul.f32 %v3203_v9, %v1349_v25  ;;  %v1332_v8 = vrot.slane %v1302_v53, 2  ;;  %v1334_v14 = vrot.slane %v1303_v62, 2  ;;  %v1272_v6 = vsel %vm975_vm9, %v1270_v58, %v1271_v28  ;;  %v2025_v58 = vld [vmem:[%s2651_s10 + $0x50] sm:$0xff]  ;;  %s3601_s10 = sld [smem:[#allocation20_spill]] }
 0x1b2   : > { %v1372_v34 = vadd.f32 %v3222_v49, %v1360_v15  ;;  %v1274_v21 = vsel %vm975_vm9, %v1271_v28, %v1273_v37  ;;  %v1289_v29 = vadd.f32 %v1272_v6, %v1228_v48  ;;  %v1525_v50 = vrot.slane %v2018_v2, 1 }
 0x1b3   : > { %v1373_v1 = vadd.f32 %v3222_v49, %v1361_v46  ;;  %v1290_v18 = vadd.f32 %v1274_v21, %v1229_v41  ;;  %v1333_v27 = vsel %vm1037_vm10, %v1331_v47, %v1332_v8  ;;  %v1335_v44 = vsel %vm1037_vm10, %v1332_v8, %v1334_v14  ;;  %v2027_v47 = vld [vmem:[%s2659_s20] sm:$0xff]  ;;  %v2029_v21 = vld [vmem:[%s2659_s20 + $0x10] sm:$0xff] }
 0x1b4   : > { %v1380_v0 = vmax.f32 %v1372_v34, 0.0  ;;  %v1350_v40 = vadd.f32 %v1333_v27, %v1289_v29  ;;  %v1526_v43 = vrot.slane %v2019_v17, 1  ;;  %v1528_v16 = vrot.slane %v2020_v19, 1 }
 0x1b5   : > { %v1381_v51 = vmax.f32 %v1373_v1, 0.0  ;;  %v1351_v7 = vadd.f32 %v1335_v44, %v1290_v18  ;;  %v1530_v45 = vrot.slane %v2021_v39, 1  ;;  %v1531_v11 = vrot.slane %v2022_v55, 1  ;;  %v2028_v1 = vld [vmem:[%s2659_s20 + $0x8] sm:$0xff]  ;;  %s1850_s20 = sshll.u32 %s3535_s11, 3 }
 0x1b6   : > { %v1388_v54 = vmin.f32 %v1380_v0, 6.0  ;;  %v1362_v24 = vmul.f32 %v3203_v9, %v1350_v40  ;;  %v1533_v22 = vrot.slane %v2023_v4, 1  ;;  %v1535_v26 = vrot.slane %v2024_v52, 1 }
 0x1b7   : > { %v1389_v30 = vmin.f32 %v1381_v51, 6.0  ;;  %v1363_v57 = vmul.f32 %v3203_v9, %v1351_v7  ;;  %v1527_v9 = vsel %vm975_vm9, %v1525_v50, %v1526_v43  ;;  %v1532_v42 = vsel %vm975_vm9, %v1530_v45, %v1531_v11  ;;  %s1828_s3 = sshll.u32 %s3601_s10, 5 }
 0x1b8   : > { %v1374_v63 = vadd.f32 %v3222_v49, %v1362_v24  ;;  %v1534_v5 = vsel %vm975_vm9, %v1531_v11, %v1533_v22  ;;  %v1536_v23 = vrot.slane %v2025_v58, 1  ;;  %v1538_v28 = vrot.slane %v2026_v59, 1  ;;  %s1582_s23 = sadd.s32 %s1850_s20, %s1828_s3 }
 0x1b9   : > { %v1394_v3 = vpack.c.bf16 %v1389_v30, %v1388_v54  ;;  %v1375_v10 = vadd.f32 %v3222_v49, %v1363_v57  ;;  %v1529_v49 = vsel %vm975_vm9, %v1526_v43, %v1528_v16  ;;  %v1540_v34 = vrot.slane %v2027_v47, 1  ;;  %s1829_s28 = sshll.u32 %s1582_s23, 3 }
 0x1ba   : > { %v1382_v12 = vmax.f32 %v1374_v63, 0.0  ;;  %v1537_v25 = vsel %vm975_vm9, %v1535_v26, %v1536_v23  ;;  %v1539_v15 = vsel %vm975_vm9, %v1536_v23, %v1538_v28  ;;  %v1541_v20 = vrot.slane %v2028_v1, 1  ;;  %s1584_s30 = scalar_lea.hbm %s3602_s13, %s1829_s28 }
 0x1bb   : > { %v1383_v36 = vmax.f32 %v1375_v10, 0.0  ;;  %v1543_v0 = vrot.slane %v2029_v21, 1  ;;  %s1587_s11 = sshll.u32 %s1584_s30, 4  ;;  %s1588_s11 = int_to_ptr.hbm [resolvable:$true] %s1587_s11 }
 0x1bc   : > { %v1390_v13 = vmin.f32 %v1382_v12, 6.0  ;;  %v1542_v14 = vsel %vm975_vm9, %v1540_v34, %v1541_v20  ;;  %s2212_s9 = sshra.s32 %s1588_s11, 4  ;;  %s2213_s9 = int_to_ptr.hbm [resolvable:$true] %s2212_s9 }
 0x1bd   : > { %v1391_v56 = vmin.f32 %v1383_v36, 6.0  ;;  %v1544_v27 = vsel %vm975_vm9, %v1541_v20, %v1543_v0  ;;  %s2214_s16 = scalar_lea.hbm %s2213_s9, 64  ;;  %p2219_p12 = scmp.lt.s32.totalorder %s2213_s9, %s3602_s13 }
 0x1be   : > { %p2215_p6 = scmp.ne.s32.totalorder %s2213_s9, %s2214_s16  ;;  %p2220_p8 = scmp.lt.s32.totalorder %s2218_s18, %s2214_s16 }
 0x1bf   : > { %1478 = vmatmul.bf16.gmra.mxu1 %v1394_v3  ;;  %v1395_v60 = vpack.c.bf16 %v1391_v56, %v1390_v13 }
 0x1c0   : > { %p2216_p13 = pnand %p2215_p6, %p2538_p7  ;;  %p2221_p9 = por %p2220_p8, %p2219_p12 }
 0x1c2   : > { %p2217_p10 = pneg %p2216_p13 }
 0x1c4   : > { %p2222_p11 = pnand %p2221_p9, %p2217_p10 }
 0x1cf   : > { %1483 = vmatmul.bf16.gmra.mxu1 %v1395_v60 }
 0x21a   : > { %v1469_v32 = vpop.f32.mrf.mxu1 }
 0x21b   : > { %v1493_v61 = vmul.f32 %v2016_v31, %v1469_v32 }
 0x21d   : > { %v1505_v33 = vadd.f32 %v2017_v35, %v1493_v61 }
 0x21f   : > { %v1553_v38 = vadd.f32 %v1527_v9, %v1505_v33 }
 0x221   : > { %1561 = vst [vmem:[%s3391_s7] sm:$0xff] %v1553_v38 }
 0x222   : > { %v1471_v53 = vpop.f32.mrf.mxu1 }
 0x223   : > { %v1494_v37 = vmul.f32 %v2016_v31, %v1471_v53 }
 0x225   : > { %v1506_v62 = vadd.f32 %v2017_v35, %v1494_v37 }
 0x227   : > { %v1554_v46 = vadd.f32 %v1529_v49, %v1506_v62 }
 0x229   : > { %1562 = vst [vmem:[%s3391_s7 + $0x8] sm:$0xff] %v1554_v46 }
 0x22c   : > { %v1474_v48 = vpop.f32.mrf.mxu1 }
 0x22d   : > { %v1495_v41 = vmul.f32 %v2016_v31, %v1474_v48 }
 0x22f   : > { %v1507_v8 = vadd.f32 %v2017_v35, %v1495_v41 }
 0x231   : > { %v1555_v6 = vadd.f32 %v1532_v42, %v1507_v8 }
 0x233   : > { %1563 = vst [vmem:[%s3391_s7 + $0x10] sm:$0xff] %v1555_v6 }
 0x234   : > { %v1476_v51 = vpop.f32.mrf.mxu1 }
 0x235   : > { %v1496_v29 = vmul.f32 %v2016_v31, %v1476_v51 }
 0x237   : > { %v1508_v18 = vadd.f32 %v2017_v35, %v1496_v29 }
 0x239   : > { %v1556_v44 = vadd.f32 %v1534_v5, %v1508_v18 }
 0x23b   : > { %1564 = vst [vmem:[%s3391_s7 + $0x18] sm:$0xff] %v1556_v44 }
 0x23c   : > { %v1479_v54 = vpop.f32.mrf.mxu1 }
 0x23d   : > { %v1497_v30 = vmul.f32 %v2016_v31, %v1479_v54 }
 0x23f   : > { %v1509_v40 = vadd.f32 %v2017_v35, %v1497_v30 }
 0x241   : > { %v1557_v7 = vadd.f32 %v1537_v25, %v1509_v40 }
 0x243   : > { %1565 = vst [vmem:[%s3391_s7 + $0x20] sm:$0xff] %v1557_v7 }
 0x244   : > { %v1481_v3 = vpop.f32.mrf.mxu1 }
 0x245   : > { %v1498_v24 = vmul.f32 %v2016_v31, %v1481_v3 }
 0x247   : > { %v1510_v57 = vadd.f32 %v2017_v35, %v1498_v24 }
 0x249   : > { %v1558_v63 = vadd.f32 %v1539_v15, %v1510_v57 }
 0x24b   : > { %1566 = vst [vmem:[%s3391_s7 + $0x28] sm:$0xff] %v1558_v63 }
 0x24c   : > { %v1484_v10 = vpop.f32.mrf.mxu1 }
 0x24d   : > { %v1499_v12 = vmul.f32 %v2016_v31, %v1484_v10 }
 0x24f   : > { %v1511_v36 = vadd.f32 %v2017_v35, %v1499_v12 }
 0x251   : > { %v1559_v13 = vadd.f32 %v1542_v14, %v1511_v36 }
 0x253   : > { %1567 = vst [vmem:[%s3391_s7 + $0x30] sm:$0xff] %v1559_v13 }
 0x254   : > { %v1486_v56 = vpop.f32.mrf.mxu1 }
 0x255   : > { %v1500_v60 = vmul.f32 %v2016_v31, %v1486_v56 }
 0x257   : > { %v1512_v2 = vadd.f32 %v2017_v35, %v1500_v60 }
 0x259   : > { %v1560_v50 = vadd.f32 %v1544_v27, %v1512_v2 }
 0x25b   : > { %1568 = vst [vmem:[%s3391_s7 + $0x38] sm:$0xff] %v1560_v50 }
 0x25c   : > { %2225 = shalt.err (!%p2222_p11)
}
 0x25d   : > { %s2349_s14 = smov 128   ;;  %s2350_s7 = smov 8  }
 0x25e   : > { %1887 = dma.vmem_to_hbm [thread:$0]  (%p2538_p7), %s1586_s6, 1024, %s1588_s11, %s1570_s17, %s2349_s14, %s2349_s14, %s2350_s7  }
 0x25f PF: > { %s3604_s20 = sld [smem:[#allocation18_spill]]  ;;  %p1909_p0 = scmp.ge.s32.totalorder %s2334_s27, 2 }
 0x261   : > { %p1900_p1 = pnand %p1909_p0, %p2545_p2 }
 0x263   : > { %p1901_p3 = pneg %p1900_p1 }
 0x265   : > { %s1602_s23 = sand.u32 1, %s3604_s20  }
 0x266   : > { %s1603_s28 = scalar_lea.sflag [#allocation4], %s1602_s23 }
 0x267   : > { %2287 = dma.done.wait (%p1901_p3), %s1603_s28, 1024  }
 0x268   : > { %2289 = vsyncadd (%p1901_p3), %s1603_s28, 4294966272  ;;  %s31_s27 = sadd.s32 1, %s2334_s27   ;;  %s3606_s17 = sld [smem:[#allocation17_spill]] }
 0x269   : > { %p28_p5 = scmp.ge.s32.totalorder %s31_s27, 10   ;;  %s3607_s12 = sld [smem:[#allocation25_spill]] }
 0x26a   : > { %s3608_s24 = sld [smem:[#allocation24_spill]]  ;;  %s3611_s18 = smov %s2302_s19 }
 0x26b   : > { %s3609_s4 = sld [smem:[#allocation22_spill]]  ;;  %s3613_s20 = smov %s2310_s21 }
 0x26c   : > { %s3610_s30 = sld [smem:[#allocation23_spill]]  ;;  %s3614_s21 = smov %s2314_s22 }
 0x26d   : > { %s3616_s23 = smov %s2326_s25 }
 0x26e   :  { %30 = sbr.rel (!%p28_p5) target bundleno = 21 (0x15), region = 134 }
 0x26f   : > { %s3612_s19 = smov %s3607_s12 }
 0x270   : > { %s3615_s22 = smov %s3608_s24  ;;  %s3617_s24 = smov %s2330_s26 }
 0x271   : > { %s3618_s25 = smov %s3609_s4 }
 0x272   : > { %s3619_s26 = smov %s3610_s30 }
 0x273   :  { %1609 = vsyncpa [#allocation3], 1 }
 0x274   :  { %1611 = vsyncpa [#allocation3 + $0x1], 1 }
 0x275   :  { %1612 = vsyncpa [#allocation6], 1 }
 0x276   :  { %1614 = vsyncpa [#allocation6 + $0x1], 1 }
 0x277   :  { %1615 = vsyncpa [#allocation9], 1 }
 0x278   :  { %1616 = vsyncpa [#allocation4], 1 }
 0x279   :  { %1618 = vsyncpa [#allocation4 + $0x1], 1 }

</bundles_post_ra>
